<compile_context>
chip_gen: v5e
topology: v5e:2x2
jax: 0.10.0
libtpu: 0.0.40
codegen_flags: <defaults>
</compile_context>

<pallas_src>
import jax
import jax.numpy as jnp
from jax.experimental import pallas as pl
from jax.experimental.pallas import tpu as pltpu

# ---------------- model hyper-parameters (small, consistent with Block) ----------------
BATCH = 2
SEQ = 8
EMBED_DIM = 64
NUM_HEADS = 4
HEAD_DIM = EMBED_DIM // NUM_HEADS
MLP_HIDDEN = int(EMBED_DIM * 4.0)
SCALE = HEAD_DIM ** -0.5
LN_EPS = 1e-5                      # nn.LayerNorm default eps

PARAM_ORDER = ["ln1w", "ln1b", "qkvw", "projw", "projb",
               "ln2w", "ln2b", "fc1w", "fc1b", "fc2w", "fc2b"]


# ---------------- in-kernel math helpers ----------------
def _layernorm(x, w, b):
    mu = jnp.mean(x, axis=-1, keepdims=True)
    xc = x - mu
    var = jnp.mean(xc * xc, axis=-1, keepdims=True)
    return xc * jax.lax.rsqrt(var + LN_EPS) * w + b


def _erf(x):
    # Abramowitz & Stegun 7.1.26 (|err| < 1.5e-7) -- avoids relying on lax.erf lowering.
    a1, a2, a3, a4, a5 = 0.254829592, -0.284496736, 1.421413741, -1.453152027, 1.061405429
    p = 0.3275911
    sgn = jnp.where(x >= 0.0, 1.0, -1.0)
    ax = jnp.abs(x)
    t = 1.0 / (1.0 + p * ax)
    poly = ((((a5 * t + a4) * t + a3) * t + a2) * t + a1) * t
    return sgn * (1.0 - poly * jnp.exp(-ax * ax))


def _gelu(x):
    # exact (erf-based) GELU, matching torch.nn.GELU() default
    return 0.5 * x * (1.0 + _erf(x * 0.7071067811865476))


# ---------------- the Pallas kernel ----------------
def block_kernel(x_ref, ln1w_ref, ln1b_ref, qkvw_ref, projw_ref, projb_ref,
                 ln2w_ref, ln2b_ref, fc1w_ref, fc1b_ref, fc2w_ref, fc2b_ref,
                 y_ref, attn_ref):
    B, N, C = x_ref.shape
    BN = B * N

    # stacked (batch*token, C) activation tile -> wide matmuls everywhere
    x = x_ref[...].reshape(BN, C)

    # ---------- Attention (pre-LN) ----------
    n1 = _layernorm(x, ln1w_ref[...], ln1b_ref[...])
    qkv = jnp.dot(n1, qkvw_ref[...], preferred_element_type=jnp.float32)     # (BN, 3C)
    # fold the softmax scale into q once (cheaper than scaling every (N,N) score tile)
    q = qkv[:, 0:C] * SCALE
    k = qkv[:, C:2 * C]
    v = qkv[:, 2 * C:3 * C]

    ctx_heads = []
    for h in range(NUM_HEADS):                                               # H=4, static -> unrolled
        lo = h * HEAD_DIM
        qh = q[:, lo:lo + HEAD_DIM].reshape(B, N, HEAD_DIM)
        kh = k[:, lo:lo + HEAD_DIM].reshape(B, N, HEAD_DIM)
        vh = v[:, lo:lo + HEAD_DIM].reshape(B, N, HEAD_DIM)
        s = jnp.einsum("bqd,bkd->bqk", qh, kh,
                       preferred_element_type=jnp.float32)                   # (B, N, N)
        m = jnp.max(s, axis=-1, keepdims=True)
        e = jnp.exp(s - m)
        inv = pl.reciprocal(jnp.sum(e, axis=-1, keepdims=True), approx=True)  # EUP, free slot
        p = e * inv                                                          # softmax
        attn_ref[h] = p.astype(attn_ref.dtype)                               # (B, N, N)
        ctx = jnp.einsum("bqk,bkd->bqd", p, vh,
                         preferred_element_type=jnp.float32)                 # (B, N, HD)
        ctx_heads.append(ctx.reshape(BN, HEAD_DIM))

    ctx = jnp.concatenate(ctx_heads, axis=-1)                                # (BN, C)
    attn_out = jnp.dot(ctx, projw_ref[...],
                       preferred_element_type=jnp.float32) + projb_ref[...]  # ONE proj dot
    x = x + attn_out                                                         # residual

    # ---------- MLP (pre-LN) ----------
    n2 = _layernorm(x, ln2w_ref[...], ln2b_ref[...])
    hdn = _gelu(jnp.dot(n2, fc1w_ref[...],
                        preferred_element_type=jnp.float32) + fc1b_ref[...])
    x = x + (jnp.dot(hdn, fc2w_ref[...],
                     preferred_element_type=jnp.float32) + fc2b_ref[...])    # residual

    y_ref[...] = x.reshape(B, N, C).astype(y_ref.dtype)
    # TODO(synk): attn_drop / proj_drop / drop / drop_path are identity (all rates 0.0).


# ---------------- wrapper ----------------
def block_forward(x, params):
    B, N, C = x.shape
    ordered = [params[name] for name in PARAM_ORDER]

    in_specs = [pl.BlockSpec((B, N, C), lambda i: (0, 0, 0))]
    for w in ordered:
        in_specs.append(
            pl.BlockSpec(w.shape, (lambda nd: (lambda i: (0,) * nd))(w.ndim)))

    out_shapes = (jax.ShapeDtypeStruct((B, N, C), jnp.float32),
                  jax.ShapeDtypeStruct((NUM_HEADS, B, N, N), jnp.float32))
    out_specs = (pl.BlockSpec((B, N, C), lambda i: (0, 0, 0)),
                 pl.BlockSpec((NUM_HEADS, B, N, N), lambda i: (0, 0, 0, 0)))

    y, attn_hb = pl.pallas_call(
        block_kernel,
        out_shape=out_shapes,
        grid=(1,),                                  # single step: no per-step overhead
        in_specs=in_specs,
        out_specs=out_specs,
        compiler_params=pltpu.CompilerParams(dimension_semantics=("arbitrary",)),
    )(x, *ordered)

    # kernel stores attention head-major (H, B, N, N); return torch layout (B, H, N, N)
    return y, jnp.transpose(attn_hb, (1, 0, 2, 3))


# ---------------- pure-JAX reference (sanity check) ----------------
def reference_forward(x, p):
    with jax.default_matmul_precision("highest"):
        B, N, C = x.shape
        H, HD = NUM_HEADS, HEAD_DIM

        def ln(y, w, b):
            mu = y.mean(-1, keepdims=True)
            yc = y - mu
            var = (yc * yc).mean(-1, keepdims=True)
            return yc / jnp.sqrt(var + LN_EPS) * w[0] + b[0]

        n1 = ln(x, p["ln1w"], p["ln1b"])
        qkv = n1 @ p["qkvw"]                                        # (B, N, 3C)
        qkv = qkv.reshape(B, N, 3, H, HD).transpose(2, 0, 3, 1, 4)
        q, k, v = qkv[0], qkv[1], qkv[2]                            # (B, H, N, HD)
        a = jnp.einsum("bhqd,bhkd->bhqk", q, k) * SCALE
        a = jax.nn.softmax(a, axis=-1)
        o = jnp.einsum("bhqk,bhkd->bhqd", a, v).transpose(0, 2, 1, 3).reshape(B, N, C)
        x = x + (o @ p["projw"] + p["projb"][0])
        n2 = ln(x, p["ln2w"], p["ln2b"])
        mlp = (jax.nn.gelu(n2 @ p["fc1w"] + p["fc1b"][0], approximate=False)
               @ p["fc2w"] + p["fc2b"][0])
        x = x + mlp
        return x, a


# ---------------- deterministic parameter construction ----------------
def make_params(key):
    keys = iter(jax.random.split(key, 16))

    def rnd(shape, std=0.02):
        return (std * jax.random.normal(next(keys), shape)).astype(jnp.float32)

    C, HID = EMBED_DIM, MLP_HIDDEN
    return {
        "ln1w": (1.0 + rnd((1, C), 0.05)).astype(jnp.float32),
        "ln1b": rnd((1, C), 0.05),
        "qkvw": rnd((C, 3 * C)),          # qkv_bias=False (module default)
        "projw": rnd((C, C)),
        "projb": rnd((1, C)),
        "ln2w": (1.0 + rnd((1, C), 0.05)).astype(jnp.float32),
        "ln2b": rnd((1, C), 0.05),
        "fc1w": rnd((C, HID)),
        "fc1b": rnd((1, HID)),
        "fc2w": rnd((HID, C)),
        "fc2b": rnd((1, C)),
    }


if __name__ == "__main__":
    key = jax.random.PRNGKey(0)
    kx, kp = jax.random.split(key)
    params = make_params(kp)
    x = jax.random.normal(kx, (BATCH, SEQ, EMBED_DIM), dtype=jnp.float32)

    y, attn = block_forward(x, params)
    y = jax.block_until_ready(y)
    attn = jax.block_until_ready(attn)
    assert y.shape == (BATCH, SEQ, EMBED_DIM)
    assert attn.shape == (BATCH, NUM_HEADS, SEQ, SEQ)

    y_ref, attn_ref = reference_forward(x, params)
    err_y = float(jnp.max(jnp.abs(y - y_ref)))
    err_a = float(jnp.max(jnp.abs(attn - attn_ref)))
    if not (jnp.allclose(y, y_ref, atol=2e-3, rtol=2e-2)
            and jnp.allclose(attn, attn_ref, atol=2e-3, rtol=2e-2)):
        raise AssertionError(
            f"Pallas output mismatch vs reference: max|dy|={err_y}, max|dattn|={err_a}")

    print("KERNEL_OK")
</pallas_src>

<mosaic_0001>
module attributes {stable_mosaic.version = 11 : i64} {
  func.func @block_kernel(%arg0: i32, %arg1: memref<2x8x64xf32, #tpu.memory_space<vmem>>, %arg2: memref<1x64xf32, #tpu.memory_space<vmem>>, %arg3: memref<1x64xf32, #tpu.memory_space<vmem>>, %arg4: memref<64x192xf32, #tpu.memory_space<vmem>>, %arg5: memref<64x64xf32, #tpu.memory_space<vmem>>, %arg6: memref<1x64xf32, #tpu.memory_space<vmem>>, %arg7: memref<1x64xf32, #tpu.memory_space<vmem>>, %arg8: memref<1x64xf32, #tpu.memory_space<vmem>>, %arg9: memref<64x256xf32, #tpu.memory_space<vmem>>, %arg10: memref<1x256xf32, #tpu.memory_space<vmem>>, %arg11: memref<256x64xf32, #tpu.memory_space<vmem>>, %arg12: memref<1x64xf32, #tpu.memory_space<vmem>>, %arg13: memref<2x8x64xf32, #tpu.memory_space<vmem>>, %arg14: memref<4x2x8x8xf32, #tpu.memory_space<vmem>>) attributes {dimension_semantics = [#tpu.dimension_semantics<arbitrary>], iteration_bounds = array<i64: 1>, scalar_prefetch = 0 : i64, scratch_operands = 0 : i64, tpu.core_type = #tpu.core_type<tc>, window_params = [{pipeline_mode = #tpu.pipeline_mode<synchronous>, transform_indices = @transform_0, window_bounds = array<i64: 2, 8, 64>}, {pipeline_mode = #tpu.pipeline_mode<synchronous>, transform_indices = @transform_1, window_bounds = array<i64: 1, 64>}, {pipeline_mode = #tpu.pipeline_mode<synchronous>, transform_indices = @transform_2, window_bounds = array<i64: 1, 64>}, {pipeline_mode = #tpu.pipeline_mode<synchronous>, transform_indices = @transform_3, window_bounds = array<i64: 64, 192>}, {pipeline_mode = #tpu.pipeline_mode<synchronous>, transform_indices = @transform_4, window_bounds = array<i64: 64, 64>}, {pipeline_mode = #tpu.pipeline_mode<synchronous>, transform_indices = @transform_5, window_bounds = array<i64: 1, 64>}, {pipeline_mode = #tpu.pipeline_mode<synchronous>, transform_indices = @transform_6, window_bounds = array<i64: 1, 64>}, {pipeline_mode = #tpu.pipeline_mode<synchronous>, transform_indices = @transform_7, window_bounds = array<i64: 1, 64>}, {pipeline_mode = #tpu.pipeline_mode<synchronous>, transform_indices = @transform_8, window_bounds = array<i64: 64, 256>}, {pipeline_mode = #tpu.pipeline_mode<synchronous>, transform_indices = @transform_9, window_bounds = array<i64: 1, 256>}, {pipeline_mode = #tpu.pipeline_mode<synchronous>, transform_indices = @transform_10, window_bounds = array<i64: 256, 64>}, {pipeline_mode = #tpu.pipeline_mode<synchronous>, transform_indices = @transform_11, window_bounds = array<i64: 1, 64>}, {pipeline_mode = #tpu.pipeline_mode<synchronous>, transform_indices = @transform_12, window_bounds = array<i64: 2, 8, 64>}, {pipeline_mode = #tpu.pipeline_mode<synchronous>, transform_indices = @transform_13, window_bounds = array<i64: 4, 2, 8, 8>}]} {
    %c0 = arith.constant 0 : index
    %c0_0 = arith.constant 0 : index
    %c0_1 = arith.constant 0 : index
    %0 = vector.load %arg1[%c0, %c0_0, %c0_1] : memref<2x8x64xf32, #tpu.memory_space<vmem>>, vector<2x8x64xf32>
    %1 = vector.shape_cast %0 : vector<2x8x64xf32> to vector<16x64xf32>
    %c0_2 = arith.constant 0 : index
    %c0_3 = arith.constant 0 : index
    %2 = vector.load %arg2[%c0_2, %c0_3] : memref<1x64xf32, #tpu.memory_space<vmem>>, vector<1x64xf32>
    %c0_4 = arith.constant 0 : index
    %c0_5 = arith.constant 0 : index
    %3 = vector.load %arg3[%c0_4, %c0_5] : memref<1x64xf32, #tpu.memory_space<vmem>>, vector<1x64xf32>
    %cst = arith.constant dense<0.000000e+00> : vector<16xf32>
    %4 = vector.multi_reduction <add>, %1, %cst [1] : vector<16x64xf32> to vector<16xf32>
    %5 = vector.shape_cast %4 : vector<16xf32> to vector<16x1xf32>
    %cst_6 = arith.constant 6.400000e+01 : f32
    %6 = vector.broadcast %cst_6 : f32 to vector<16x1xf32>
    %7 = arith.divf %5, %6 : vector<16x1xf32>
    %8 = vector.broadcast %7 : vector<16x1xf32> to vector<16x64xf32>
    %9 = arith.subf %1, %8 : vector<16x64xf32>
    %10 = arith.mulf %9, %9 : vector<16x64xf32>
    %cst_7 = arith.constant dense<0.000000e+00> : vector<16xf32>
    %11 = vector.multi_reduction <add>, %10, %cst_7 [1] : vector<16x64xf32> to vector<16xf32>
    %12 = vector.shape_cast %11 : vector<16xf32> to vector<16x1xf32>
    %cst_8 = arith.constant 6.400000e+01 : f32
    %13 = vector.broadcast %cst_8 : f32 to vector<16x1xf32>
    %14 = arith.divf %12, %13 : vector<16x1xf32>
    %cst_9 = arith.constant 9.99999974E-6 : f32
    %15 = vector.broadcast %cst_9 : f32 to vector<16x1xf32>
    %16 = arith.addf %14, %15 : vector<16x1xf32>
    %17 = math.rsqrt %16 : vector<16x1xf32>
    %18 = vector.broadcast %17 : vector<16x1xf32> to vector<16x64xf32>
    %19 = arith.mulf %9, %18 : vector<16x64xf32>
    %20 = vector.broadcast %2 : vector<1x64xf32> to vector<16x64xf32>
    %21 = arith.mulf %19, %20 : vector<16x64xf32>
    %22 = vector.broadcast %3 : vector<1x64xf32> to vector<16x64xf32>
    %23 = arith.addf %21, %22 : vector<16x64xf32>
    %c0_10 = arith.constant 0 : index
    %c0_11 = arith.constant 0 : index
    %24 = vector.load %arg4[%c0_10, %c0_11] : memref<64x192xf32, #tpu.memory_space<vmem>>, vector<64x192xf32>
    %cst_12 = arith.constant dense<0.000000e+00> : vector<16x192xf32>
    %25 = tpu.matmul %23, %24, %cst_12 {dimension_numbers = #tpu.dot_dimension_numbers<[1], [0], [0], [1], [0, 0, 1, 1], [], []>} : vector<16x64xf32>, vector<64x192xf32>, vector<16x192xf32> -> vector<16x192xf32>
    %26 = vector.extract_strided_slice %25 {offsets = [0, 0], sizes = [16, 64], strides = [1, 1]} : vector<16x192xf32> to vector<16x64xf32>
    %cst_13 = arith.constant 2.500000e-01 : f32
    %27 = vector.broadcast %cst_13 : f32 to vector<16x64xf32>
    %28 = arith.mulf %26, %27 : vector<16x64xf32>
    %29 = vector.extract_strided_slice %25 {offsets = [0, 64], sizes = [16, 64], strides = [1, 1]} : vector<16x192xf32> to vector<16x64xf32>
    %30 = vector.extract_strided_slice %25 {offsets = [0, 128], sizes = [16, 64], strides = [1, 1]} : vector<16x192xf32> to vector<16x64xf32>
    %31 = vector.extract_strided_slice %28 {offsets = [0, 0], sizes = [16, 16], strides = [1, 1]} : vector<16x64xf32> to vector<16x16xf32>
    %32 = vector.shape_cast %31 : vector<16x16xf32> to vector<2x8x16xf32>
    %33 = vector.extract_strided_slice %29 {offsets = [0, 0], sizes = [16, 16], strides = [1, 1]} : vector<16x64xf32> to vector<16x16xf32>
    %34 = vector.shape_cast %33 : vector<16x16xf32> to vector<2x8x16xf32>
    %35 = vector.extract_strided_slice %30 {offsets = [0, 0], sizes = [16, 16], strides = [1, 1]} : vector<16x64xf32> to vector<16x16xf32>
    %36 = vector.shape_cast %35 : vector<16x16xf32> to vector<2x8x16xf32>
    "tpu.trace_start"() <{level = 10 : i32, message = "bqd,bkd->bqk"}> : () -> ()
    %cst_14 = arith.constant dense<0.000000e+00> : vector<2x8x8xf32>
    %37 = tpu.matmul %32, %34, %cst_14 {dimension_numbers = #tpu.dot_dimension_numbers<[2], [2], [1], [1], [0, 0, 0, 1, 1, 1], [0], [0]>} : vector<2x8x16xf32>, vector<2x8x16xf32>, vector<2x8x8xf32> -> vector<2x8x8xf32>
    "tpu.trace_stop"() : () -> ()
    %cst_15 = arith.constant dense<0xFF800000> : vector<2x8xf32>
    %38 = vector.multi_reduction <maximumf>, %37, %cst_15 [2] : vector<2x8x8xf32> to vector<2x8xf32>
    %39 = vector.shape_cast %38 : vector<2x8xf32> to vector<2x8x1xf32>
    %40 = vector.broadcast %39 : vector<2x8x1xf32> to vector<2x8x8xf32>
    %41 = arith.subf %37, %40 : vector<2x8x8xf32>
    %42 = math.exp %41 : vector<2x8x8xf32>
    %cst_16 = arith.constant dense<0.000000e+00> : vector<2x8xf32>
    %43 = vector.multi_reduction <add>, %42, %cst_16 [2] : vector<2x8x8xf32> to vector<2x8xf32>
    %44 = vector.shape_cast %43 : vector<2x8xf32> to vector<2x8x1xf32>
    %45 = tpu.reciprocal %44 {approx = true} : vector<2x8x1xf32> -> vector<2x8x1xf32>
    %46 = vector.broadcast %45 : vector<2x8x1xf32> to vector<2x8x8xf32>
    %47 = arith.mulf %42, %46 : vector<2x8x8xf32>
    %c0_17 = arith.constant 0 : index
    %c0_18 = arith.constant 0 : index
    %c0_19 = arith.constant 0 : index
    %c0_20 = arith.constant 0 : index
    %48 = vector.load %arg14[%c0_17, %c0_18, %c0_19, %c0_20] : memref<4x2x8x8xf32, #tpu.memory_space<vmem>>, vector<1x2x8x8xf32>
    %49 = vector.shape_cast %48 : vector<1x2x8x8xf32> to vector<2x8x8xf32>
    %50 = vector.shape_cast %47 : vector<2x8x8xf32> to vector<1x2x8x8xf32>
    tpu.vector_store %arg14[%c0_17, %c0_18, %c0_19, %c0_20], %50 {strides = array<i32>} : memref<4x2x8x8xf32, #tpu.memory_space<vmem>>, vector<1x2x8x8xf32>,
    "tpu.trace_start"() <{level = 10 : i32, message = "bqk,bkd->bqd"}> : () -> ()
    %cst_21 = arith.constant dense<0.000000e+00> : vector<2x8x16xf32>
    %51 = tpu.matmul %47, %36, %cst_21 {dimension_numbers = #tpu.dot_dimension_numbers<[2], [1], [1], [2], [0, 0, 0, 1, 1, 2], [0], [0]>} : vector<2x8x8xf32>, vector<2x8x16xf32>, vector<2x8x16xf32> -> vector<2x8x16xf32>
    "tpu.trace_stop"() : () -> ()
    %52 = vector.shape_cast %51 : vector<2x8x16xf32> to vector<16x16xf32>
    %53 = vector.extract_strided_slice %28 {offsets = [0, 16], sizes = [16, 16], strides = [1, 1]} : vector<16x64xf32> to vector<16x16xf32>
    %54 = vector.shape_cast %53 : vector<16x16xf32> to vector<2x8x16xf32>
    %55 = vector.extract_strided_slice %29 {offsets = [0, 16], sizes = [16, 16], strides = [1, 1]} : vector<16x64xf32> to vector<16x16xf32>
    %56 = vector.shape_cast %55 : vector<16x16xf32> to vector<2x8x16xf32>
    %57 = vector.extract_strided_slice %30 {offsets = [0, 16], sizes = [16, 16], strides = [1, 1]} : vector<16x64xf32> to vector<16x16xf32>
    %58 = vector.shape_cast %57 : vector<16x16xf32> to vector<2x8x16xf32>
    "tpu.trace_start"() <{level = 10 : i32, message = "bqd,bkd->bqk"}> : () -> ()
    %cst_22 = arith.constant dense<0.000000e+00> : vector<2x8x8xf32>
    %59 = tpu.matmul %54, %56, %cst_22 {dimension_numbers = #tpu.dot_dimension_numbers<[2], [2], [1], [1], [0, 0, 0, 1, 1, 1], [0], [0]>} : vector<2x8x16xf32>, vector<2x8x16xf32>, vector<2x8x8xf32> -> vector<2x8x8xf32>
    "tpu.trace_stop"() : () -> ()
    %cst_23 = arith.constant dense<0xFF800000> : vector<2x8xf32>
    %60 = vector.multi_reduction <maximumf>, %59, %cst_23 [2] : vector<2x8x8xf32> to vector<2x8xf32>
    %61 = vector.shape_cast %60 : vector<2x8xf32> to vector<2x8x1xf32>
    %62 = vector.broadcast %61 : vector<2x8x1xf32> to vector<2x8x8xf32>
    %63 = arith.subf %59, %62 : vector<2x8x8xf32>
    %64 = math.exp %63 : vector<2x8x8xf32>
    %cst_24 = arith.constant dense<0.000000e+00> : vector<2x8xf32>
    %65 = vector.multi_reduction <add>, %64, %cst_24 [2] : vector<2x8x8xf32> to vector<2x8xf32>
    %66 = vector.shape_cast %65 : vector<2x8xf32> to vector<2x8x1xf32>
    %67 = tpu.reciprocal %66 {approx = true} : vector<2x8x1xf32> -> vector<2x8x1xf32>
    %68 = vector.broadcast %67 : vector<2x8x1xf32> to vector<2x8x8xf32>
    %69 = arith.mulf %64, %68 : vector<2x8x8xf32>
    %c1 = arith.constant 1 : index
    %c0_25 = arith.constant 0 : index
    %c0_26 = arith.constant 0 : index
    %c0_27 = arith.constant 0 : index
    %70 = vector.load %arg14[%c1, %c0_25, %c0_26, %c0_27] : memref<4x2x8x8xf32, #tpu.memory_space<vmem>>, vector<1x2x8x8xf32>
    %71 = vector.shape_cast %70 : vector<1x2x8x8xf32> to vector<2x8x8xf32>
    %72 = vector.shape_cast %69 : vector<2x8x8xf32> to vector<1x2x8x8xf32>
    tpu.vector_store %arg14[%c1, %c0_25, %c0_26, %c0_27], %72 {strides = array<i32>} : memref<4x2x8x8xf32, #tpu.memory_space<vmem>>, vector<1x2x8x8xf32>,
    "tpu.trace_start"() <{level = 10 : i32, message = "bqk,bkd->bqd"}> : () -> ()
    %cst_28 = arith.constant dense<0.000000e+00> : vector<2x8x16xf32>
    %73 = tpu.matmul %69, %58, %cst_28 {dimension_numbers = #tpu.dot_dimension_numbers<[2], [1], [1], [2], [0, 0, 0, 1, 1, 2], [0], [0]>} : vector<2x8x8xf32>, vector<2x8x16xf32>, vector<2x8x16xf32> -> vector<2x8x16xf32>
    "tpu.trace_stop"() : () -> ()
    %74 = vector.shape_cast %73 : vector<2x8x16xf32> to vector<16x16xf32>
    %75 = vector.extract_strided_slice %28 {offsets = [0, 32], sizes = [16, 16], strides = [1, 1]} : vector<16x64xf32> to vector<16x16xf32>
    %76 = vector.shape_cast %75 : vector<16x16xf32> to vector<2x8x16xf32>
    %77 = vector.extract_strided_slice %29 {offsets = [0, 32], sizes = [16, 16], strides = [1, 1]} : vector<16x64xf32> to vector<16x16xf32>
    %78 = vector.shape_cast %77 : vector<16x16xf32> to vector<2x8x16xf32>
    %79 = vector.extract_strided_slice %30 {offsets = [0, 32], sizes = [16, 16], strides = [1, 1]} : vector<16x64xf32> to vector<16x16xf32>
    %80 = vector.shape_cast %79 : vector<16x16xf32> to vector<2x8x16xf32>
    "tpu.trace_start"() <{level = 10 : i32, message = "bqd,bkd->bqk"}> : () -> ()
    %cst_29 = arith.constant dense<0.000000e+00> : vector<2x8x8xf32>
    %81 = tpu.matmul %76, %78, %cst_29 {dimension_numbers = #tpu.dot_dimension_numbers<[2], [2], [1], [1], [0, 0, 0, 1, 1, 1], [0], [0]>} : vector<2x8x16xf32>, vector<2x8x16xf32>, vector<2x8x8xf32> -> vector<2x8x8xf32>
    "tpu.trace_stop"() : () -> ()
    %cst_30 = arith.constant dense<0xFF800000> : vector<2x8xf32>
    %82 = vector.multi_reduction <maximumf>, %81, %cst_30 [2] : vector<2x8x8xf32> to vector<2x8xf32>
    %83 = vector.shape_cast %82 : vector<2x8xf32> to vector<2x8x1xf32>
    %84 = vector.broadcast %83 : vector<2x8x1xf32> to vector<2x8x8xf32>
    %85 = arith.subf %81, %84 : vector<2x8x8xf32>
    %86 = math.exp %85 : vector<2x8x8xf32>
    %cst_31 = arith.constant dense<0.000000e+00> : vector<2x8xf32>
    %87 = vector.multi_reduction <add>, %86, %cst_31 [2] : vector<2x8x8xf32> to vector<2x8xf32>
    %88 = vector.shape_cast %87 : vector<2x8xf32> to vector<2x8x1xf32>
    %89 = tpu.reciprocal %88 {approx = true} : vector<2x8x1xf32> -> vector<2x8x1xf32>
    %90 = vector.broadcast %89 : vector<2x8x1xf32> to vector<2x8x8xf32>
    %91 = arith.mulf %86, %90 : vector<2x8x8xf32>
    %c2 = arith.constant 2 : index
    %c0_32 = arith.constant 0 : index
    %c0_33 = arith.constant 0 : index
    %c0_34 = arith.constant 0 : index
    %92 = vector.load %arg14[%c2, %c0_32, %c0_33, %c0_34] : memref<4x2x8x8xf32, #tpu.memory_space<vmem>>, vector<1x2x8x8xf32>
    %93 = vector.shape_cast %92 : vector<1x2x8x8xf32> to vector<2x8x8xf32>
    %94 = vector.shape_cast %91 : vector<2x8x8xf32> to vector<1x2x8x8xf32>
    tpu.vector_store %arg14[%c2, %c0_32, %c0_33, %c0_34], %94 {strides = array<i32>} : memref<4x2x8x8xf32, #tpu.memory_space<vmem>>, vector<1x2x8x8xf32>,
    "tpu.trace_start"() <{level = 10 : i32, message = "bqk,bkd->bqd"}> : () -> ()
    %cst_35 = arith.constant dense<0.000000e+00> : vector<2x8x16xf32>
    %95 = tpu.matmul %91, %80, %cst_35 {dimension_numbers = #tpu.dot_dimension_numbers<[2], [1], [1], [2], [0, 0, 0, 1, 1, 2], [0], [0]>} : vector<2x8x8xf32>, vector<2x8x16xf32>, vector<2x8x16xf32> -> vector<2x8x16xf32>
    "tpu.trace_stop"() : () -> ()
    %96 = vector.shape_cast %95 : vector<2x8x16xf32> to vector<16x16xf32>
    %97 = vector.extract_strided_slice %28 {offsets = [0, 48], sizes = [16, 16], strides = [1, 1]} : vector<16x64xf32> to vector<16x16xf32>
    %98 = vector.shape_cast %97 : vector<16x16xf32> to vector<2x8x16xf32>
    %99 = vector.extract_strided_slice %29 {offsets = [0, 48], sizes = [16, 16], strides = [1, 1]} : vector<16x64xf32> to vector<16x16xf32>
    %100 = vector.shape_cast %99 : vector<16x16xf32> to vector<2x8x16xf32>
    %101 = vector.extract_strided_slice %30 {offsets = [0, 48], sizes = [16, 16], strides = [1, 1]} : vector<16x64xf32> to vector<16x16xf32>
    %102 = vector.shape_cast %101 : vector<16x16xf32> to vector<2x8x16xf32>
    "tpu.trace_start"() <{level = 10 : i32, message = "bqd,bkd->bqk"}> : () -> ()
    %cst_36 = arith.constant dense<0.000000e+00> : vector<2x8x8xf32>
    %103 = tpu.matmul %98, %100, %cst_36 {dimension_numbers = #tpu.dot_dimension_numbers<[2], [2], [1], [1], [0, 0, 0, 1, 1, 1], [0], [0]>} : vector<2x8x16xf32>, vector<2x8x16xf32>, vector<2x8x8xf32> -> vector<2x8x8xf32>
    "tpu.trace_stop"() : () -> ()
    %cst_37 = arith.constant dense<0xFF800000> : vector<2x8xf32>
    %104 = vector.multi_reduction <maximumf>, %103, %cst_37 [2] : vector<2x8x8xf32> to vector<2x8xf32>
    %105 = vector.shape_cast %104 : vector<2x8xf32> to vector<2x8x1xf32>
    %106 = vector.broadcast %105 : vector<2x8x1xf32> to vector<2x8x8xf32>
    %107 = arith.subf %103, %106 : vector<2x8x8xf32>
    %108 = math.exp %107 : vector<2x8x8xf32>
    %cst_38 = arith.constant dense<0.000000e+00> : vector<2x8xf32>
    %109 = vector.multi_reduction <add>, %108, %cst_38 [2] : vector<2x8x8xf32> to vector<2x8xf32>
    %110 = vector.shape_cast %109 : vector<2x8xf32> to vector<2x8x1xf32>
    %111 = tpu.reciprocal %110 {approx = true} : vector<2x8x1xf32> -> vector<2x8x1xf32>
    %112 = vector.broadcast %111 : vector<2x8x1xf32> to vector<2x8x8xf32>
    %113 = arith.mulf %108, %112 : vector<2x8x8xf32>
    %c3 = arith.constant 3 : index
    %c0_39 = arith.constant 0 : index
    %c0_40 = arith.constant 0 : index
    %c0_41 = arith.constant 0 : index
    %114 = vector.load %arg14[%c3, %c0_39, %c0_40, %c0_41] : memref<4x2x8x8xf32, #tpu.memory_space<vmem>>, vector<1x2x8x8xf32>
    %115 = vector.shape_cast %114 : vector<1x2x8x8xf32> to vector<2x8x8xf32>
    %116 = vector.shape_cast %113 : vector<2x8x8xf32> to vector<1x2x8x8xf32>
    tpu.vector_store %arg14[%c3, %c0_39, %c0_40, %c0_41], %116 {strides = array<i32>} : memref<4x2x8x8xf32, #tpu.memory_space<vmem>>, vector<1x2x8x8xf32>,
    "tpu.trace_start"() <{level = 10 : i32, message = "bqk,bkd->bqd"}> : () -> ()
    %cst_42 = arith.constant dense<0.000000e+00> : vector<2x8x16xf32>
    %117 = tpu.matmul %113, %102, %cst_42 {dimension_numbers = #tpu.dot_dimension_numbers<[2], [1], [1], [2], [0, 0, 0, 1, 1, 2], [0], [0]>} : vector<2x8x8xf32>, vector<2x8x16xf32>, vector<2x8x16xf32> -> vector<2x8x16xf32>
    "tpu.trace_stop"() : () -> ()
    %118 = vector.shape_cast %117 : vector<2x8x16xf32> to vector<16x16xf32>
    %119 = tpu.concatenate %52, %74, %96, %118 in 1 : vector<16x16xf32>, vector<16x16xf32>, vector<16x16xf32>, vector<16x16xf32> -> vector<16x64xf32>
    %c0_43 = arith.constant 0 : index
    %c0_44 = arith.constant 0 : index
    %120 = vector.load %arg5[%c0_43, %c0_44] : memref<64x64xf32, #tpu.memory_space<vmem>>, vector<64x64xf32>
    %cst_45 = arith.constant dense<0.000000e+00> : vector<16x64xf32>
    %121 = tpu.matmul %119, %120, %cst_45 {dimension_numbers = #tpu.dot_dimension_numbers<[1], [0], [0], [1], [0, 0, 1, 1], [], []>} : vector<16x64xf32>, vector<64x64xf32>, vector<16x64xf32> -> vector<16x64xf32>
    %c0_46 = arith.constant 0 : index
    %c0_47 = arith.constant 0 : index
    %122 = vector.load %arg6[%c0_46, %c0_47] : memref<1x64xf32, #tpu.memory_space<vmem>>, vector<1x64xf32>
    %123 = vector.broadcast %122 : vector<1x64xf32> to vector<16x64xf32>
    %124 = arith.addf %121, %123 : vector<16x64xf32>
    %125 = arith.addf %1, %124 : vector<16x64xf32>
    %c0_48 = arith.constant 0 : index
    %c0_49 = arith.constant 0 : index
    %126 = vector.load %arg7[%c0_48, %c0_49] : memref<1x64xf32, #tpu.memory_space<vmem>>, vector<1x64xf32>
    %c0_50 = arith.constant 0 : index
    %c0_51 = arith.constant 0 : index
    %127 = vector.load %arg8[%c0_50, %c0_51] : memref<1x64xf32, #tpu.memory_space<vmem>>, vector<1x64xf32>
    %cst_52 = arith.constant dense<0.000000e+00> : vector<16xf32>
    %128 = vector.multi_reduction <add>, %125, %cst_52 [1] : vector<16x64xf32> to vector<16xf32>
    %129 = vector.shape_cast %128 : vector<16xf32> to vector<16x1xf32>
    %cst_53 = arith.constant 6.400000e+01 : f32
    %130 = vector.broadcast %cst_53 : f32 to vector<16x1xf32>
    %131 = arith.divf %129, %130 : vector<16x1xf32>
    %132 = vector.broadcast %131 : vector<16x1xf32> to vector<16x64xf32>
    %133 = arith.subf %125, %132 : vector<16x64xf32>
    %134 = arith.mulf %133, %133 : vector<16x64xf32>
    %cst_54 = arith.constant dense<0.000000e+00> : vector<16xf32>
    %135 = vector.multi_reduction <add>, %134, %cst_54 [1] : vector<16x64xf32> to vector<16xf32>
    %136 = vector.shape_cast %135 : vector<16xf32> to vector<16x1xf32>
    %cst_55 = arith.constant 6.400000e+01 : f32
    %137 = vector.broadcast %cst_55 : f32 to vector<16x1xf32>
    %138 = arith.divf %136, %137 : vector<16x1xf32>
    %cst_56 = arith.constant 9.99999974E-6 : f32
    %139 = vector.broadcast %cst_56 : f32 to vector<16x1xf32>
    %140 = arith.addf %138, %139 : vector<16x1xf32>
    %141 = math.rsqrt %140 : vector<16x1xf32>
    %142 = vector.broadcast %141 : vector<16x1xf32> to vector<16x64xf32>
    %143 = arith.mulf %133, %142 : vector<16x64xf32>
    %144 = vector.broadcast %126 : vector<1x64xf32> to vector<16x64xf32>
    %145 = arith.mulf %143, %144 : vector<16x64xf32>
    %146 = vector.broadcast %127 : vector<1x64xf32> to vector<16x64xf32>
    %147 = arith.addf %145, %146 : vector<16x64xf32>
    %c0_57 = arith.constant 0 : index
    %c0_58 = arith.constant 0 : index
    %148 = vector.load %arg9[%c0_57, %c0_58] : memref<64x256xf32, #tpu.memory_space<vmem>>, vector<64x256xf32>
    %cst_59 = arith.constant dense<0.000000e+00> : vector<16x256xf32>
    %149 = tpu.matmul %147, %148, %cst_59 {dimension_numbers = #tpu.dot_dimension_numbers<[1], [0], [0], [1], [0, 0, 1, 1], [], []>} : vector<16x64xf32>, vector<64x256xf32>, vector<16x256xf32> -> vector<16x256xf32>
    %c0_60 = arith.constant 0 : index
    %c0_61 = arith.constant 0 : index
    %150 = vector.load %arg10[%c0_60, %c0_61] : memref<1x256xf32, #tpu.memory_space<vmem>>, vector<1x256xf32>
    %151 = vector.broadcast %150 : vector<1x256xf32> to vector<16x256xf32>
    %152 = arith.addf %149, %151 : vector<16x256xf32>
    %cst_62 = arith.constant 5.000000e-01 : f32
    %153 = vector.broadcast %cst_62 : f32 to vector<16x256xf32>
    %154 = arith.mulf %153, %152 : vector<16x256xf32>
    %cst_63 = arith.constant 0.707106769 : f32
    %155 = vector.broadcast %cst_63 : f32 to vector<16x256xf32>
    %156 = arith.mulf %152, %155 : vector<16x256xf32>
    %cst_64 = arith.constant 0.000000e+00 : f32
    %157 = vector.broadcast %cst_64 : f32 to vector<16x256xf32>
    %158 = arith.cmpf oge, %156, %157 : vector<16x256xf32>
    %cst_65 = arith.constant 1.000000e+00 : f32
    %cst_66 = arith.constant -1.000000e+00 : f32
    %159 = vector.broadcast %cst_65 : f32 to vector<16x256xf32>
    %160 = vector.broadcast %cst_66 : f32 to vector<16x256xf32>
    %161 = arith.select %158, %159, %160 : vector<16x256xi1>, vector<16x256xf32>
    %162 = math.absf %156 : vector<16x256xf32>
    %cst_67 = arith.constant 0.327591091 : f32
    %163 = vector.broadcast %cst_67 : f32 to vector<16x256xf32>
    %164 = arith.mulf %163, %162 : vector<16x256xf32>
    %cst_68 = arith.constant 1.000000e+00 : f32
    %165 = vector.broadcast %cst_68 : f32 to vector<16x256xf32>
    %166 = arith.addf %165, %164 : vector<16x256xf32>
    %cst_69 = arith.constant 1.000000e+00 : f32
    %167 = vector.broadcast %cst_69 : f32 to vector<16x256xf32>
    %168 = arith.divf %167, %166 : vector<16x256xf32>
    %cst_70 = arith.constant 1.06140542 : f32
    %169 = vector.broadcast %cst_70 : f32 to vector<16x256xf32>
    %170 = arith.mulf %169, %168 : vector<16x256xf32>
    %cst_71 = arith.constant -1.45315206 : f32
    %171 = vector.broadcast %cst_71 : f32 to vector<16x256xf32>
    %172 = arith.addf %170, %171 : vector<16x256xf32>
    %173 = arith.mulf %172, %168 : vector<16x256xf32>
    %cst_72 = arith.constant 1.42141378 : f32
    %174 = vector.broadcast %cst_72 : f32 to vector<16x256xf32>
    %175 = arith.addf %173, %174 : vector<16x256xf32>
    %176 = arith.mulf %175, %168 : vector<16x256xf32>
    %cst_73 = arith.constant -0.284496725 : f32
    %177 = vector.broadcast %cst_73 : f32 to vector<16x256xf32>
    %178 = arith.addf %176, %177 : vector<16x256xf32>
    %179 = arith.mulf %178, %168 : vector<16x256xf32>
    %cst_74 = arith.constant 0.254829586 : f32
    %180 = vector.broadcast %cst_74 : f32 to vector<16x256xf32>
    %181 = arith.addf %179, %180 : vector<16x256xf32>
    %182 = arith.mulf %181, %168 : vector<16x256xf32>
    %cst_75 = arith.constant 0.000000e+00 : f32
    %183 = vector.broadcast %cst_75 : f32 to vector<16x256xf32>
    %184 = arith.subf %183, %162 : vector<16x256xf32>
    %185 = arith.mulf %184, %162 : vector<16x256xf32>
    %186 = math.exp %185 : vector<16x256xf32>
    %187 = arith.mulf %182, %186 : vector<16x256xf32>
    %cst_76 = arith.constant 1.000000e+00 : f32
    %188 = vector.broadcast %cst_76 : f32 to vector<16x256xf32>
    %189 = arith.subf %188, %187 : vector<16x256xf32>
    %190 = arith.mulf %161, %189 : vector<16x256xf32>
    %cst_77 = arith.constant 1.000000e+00 : f32
    %191 = vector.broadcast %cst_77 : f32 to vector<16x256xf32>
    %192 = arith.addf %191, %190 : vector<16x256xf32>
    %193 = arith.mulf %154, %192 : vector<16x256xf32>
    %c0_78 = arith.constant 0 : index
    %c0_79 = arith.constant 0 : index
    %194 = vector.load %arg11[%c0_78, %c0_79] : memref<256x64xf32, #tpu.memory_space<vmem>>, vector<256x64xf32>
    %cst_80 = arith.constant dense<0.000000e+00> : vector<16x64xf32>
    %195 = tpu.matmul %193, %194, %cst_80 {dimension_numbers = #tpu.dot_dimension_numbers<[1], [0], [0], [1], [0, 0, 1, 1], [], []>} : vector<16x256xf32>, vector<256x64xf32>, vector<16x64xf32> -> vector<16x64xf32>
    %c0_81 = arith.constant 0 : index
    %c0_82 = arith.constant 0 : index
    %196 = vector.load %arg12[%c0_81, %c0_82] : memref<1x64xf32, #tpu.memory_space<vmem>>, vector<1x64xf32>
    %197 = vector.broadcast %196 : vector<1x64xf32> to vector<16x64xf32>
    %198 = arith.addf %195, %197 : vector<16x64xf32>
    %199 = arith.addf %125, %198 : vector<16x64xf32>
    %200 = vector.shape_cast %199 : vector<16x64xf32> to vector<2x8x64xf32>
    %c0_83 = arith.constant 0 : index
    %c0_84 = arith.constant 0 : index
    %c0_85 = arith.constant 0 : index
    %201 = vector.load %arg13[%c0_83, %c0_84, %c0_85] : memref<2x8x64xf32, #tpu.memory_space<vmem>>, vector<2x8x64xf32>
    tpu.vector_store %arg13[%c0_83, %c0_84, %c0_85], %200 {strides = array<i32>} : memref<2x8x64xf32, #tpu.memory_space<vmem>>, vector<2x8x64xf32>,
    return
  }
  func.func @transform_0(%arg0: i32) -> (i32, i32, i32) {
    %c0_i32 = arith.constant 0 : i32
    %c0_i32_0 = arith.constant 0 : i32
    %c0_i32_1 = arith.constant 0 : i32
    %c0_i32_2 = arith.constant 0 : i32
    return %c0_i32, %c0_i32_0, %c0_i32_1 : i32, i32, i32
  }
  func.func @transform_1(%arg0: i32) -> (i32, i32) {
    %c0_i32 = arith.constant 0 : i32
    %c0_i32_0 = arith.constant 0 : i32
    %c0_i32_1 = arith.constant 0 : i32
    return %c0_i32, %c0_i32_0 : i32, i32
  }
  func.func @transform_2(%arg0: i32) -> (i32, i32) {
    %c0_i32 = arith.constant 0 : i32
    %c0_i32_0 = arith.constant 0 : i32
    %c0_i32_1 = arith.constant 0 : i32
    return %c0_i32, %c0_i32_0 : i32, i32
  }
  func.func @transform_3(%arg0: i32) -> (i32, i32) {
    %c0_i32 = arith.constant 0 : i32
    %c0_i32_0 = arith.constant 0 : i32
    %c0_i32_1 = arith.constant 0 : i32
    return %c0_i32, %c0_i32_0 : i32, i32
  }
  func.func @transform_4(%arg0: i32) -> (i32, i32) {
    %c0_i32 = arith.constant 0 : i32
    %c0_i32_0 = arith.constant 0 : i32
    %c0_i32_1 = arith.constant 0 : i32
    return %c0_i32, %c0_i32_0 : i32, i32
  }
  func.func @transform_5(%arg0: i32) -> (i32, i32) {
    %c0_i32 = arith.constant 0 : i32
    %c0_i32_0 = arith.constant 0 : i32
    %c0_i32_1 = arith.constant 0 : i32
    return %c0_i32, %c0_i32_0 : i32, i32
  }
  func.func @transform_6(%arg0: i32) -> (i32, i32) {
    %c0_i32 = arith.constant 0 : i32
    %c0_i32_0 = arith.constant 0 : i32
    %c0_i32_1 = arith.constant 0 : i32
    return %c0_i32, %c0_i32_0 : i32, i32
  }
  func.func @transform_7(%arg0: i32) -> (i32, i32) {
    %c0_i32 = arith.constant 0 : i32
    %c0_i32_0 = arith.constant 0 : i32
    %c0_i32_1 = arith.constant 0 : i32
    return %c0_i32, %c0_i32_0 : i32, i32
  }
  func.func @transform_8(%arg0: i32) -> (i32, i32) {
    %c0_i32 = arith.constant 0 : i32
    %c0_i32_0 = arith.constant 0 : i32
    %c0_i32_1 = arith.constant 0 : i32
    return %c0_i32, %c0_i32_0 : i32, i32
  }
  func.func @transform_9(%arg0: i32) -> (i32, i32) {
    %c0_i32 = arith.constant 0 : i32
    %c0_i32_0 = arith.constant 0 : i32
    %c0_i32_1 = arith.constant 0 : i32
    return %c0_i32, %c0_i32_0 : i32, i32
  }
  func.func @transform_10(%arg0: i32) -> (i32, i32) {
    %c0_i32 = arith.constant 0 : i32
    %c0_i32_0 = arith.constant 0 : i32
    %c0_i32_1 = arith.constant 0 : i32
    return %c0_i32, %c0_i32_0 : i32, i32
  }
  func.func @transform_11(%arg0: i32) -> (i32, i32) {
    %c0_i32 = arith.constant 0 : i32
    %c0_i32_0 = arith.constant 0 : i32
    %c0_i32_1 = arith.constant 0 : i32
    return %c0_i32, %c0_i32_0 : i32, i32
  }
  func.func @transform_12(%arg0: i32) -> (i32, i32, i32) {
    %c0_i32 = arith.constant 0 : i32
    %c0_i32_0 = arith.constant 0 : i32
    %c0_i32_1 = arith.constant 0 : i32
    %c0_i32_2 = arith.constant 0 : i32
    return %c0_i32, %c0_i32_0, %c0_i32_1 : i32, i32, i32
  }
  func.func @transform_13(%arg0: i32) -> (i32, i32, i32, i32) {
    %c0_i32 = arith.constant 0 : i32
    %c0_i32_0 = arith.constant 0 : i32
    %c0_i32_1 = arith.constant 0 : i32
    %c0_i32_2 = arith.constant 0 : i32
    %c0_i32_3 = arith.constant 0 : i32
    return %c0_i32, %c0_i32_0, %c0_i32_1, %c0_i32_2 : i32, i32, i32, i32
  }
}

</mosaic_0001>

<bundles_post_ra>
// kernel: tpu_custom_call.1
= control target key start
LH: loop header
LB: loop body
LE: loop exit
PB: predicated region body
PF: predicated region fallthrough
CT: control target
= control target key end

     0   :  { %19 = vsyncpa [#allocation3], 0  ;;  %vm49_vm0 = vcmask 523264   ;;  %s1961_s0 = inlined_call_operand.vmem [shape: f32[2,8,64], index: 0, kind: input, shape index: {}]   ;;  %s1962_s1 = inlined_call_operand.vmem [shape: f32[1,64], index: 1, kind: input, shape index: {}]   ;;  %s1963_s2 = inlined_call_operand.vmem [shape: f32[1,64], index: 2, kind: input, shape index: {}]   ;;  %s1964_s3 = inlined_call_operand.vmem [shape: f32[64,192], index: 3, kind: input, shape index: {}]   ;;  %s1965_s4 = inlined_call_operand.vmem [shape: f32[64,64], index: 4, kind: input, shape index: {}]   ;;  %s1966_s5 = inlined_call_operand.vmem [shape: f32[1,64], index: 5, kind: input, shape index: {}]   ;;  %s1967_s6 = inlined_call_operand.vmem [shape: f32[1,64], index: 6, kind: input, shape index: {}]   ;;  %s1968_s7 = inlined_call_operand.vmem [shape: f32[1,64], index: 7, kind: input, shape index: {}]   ;;  %s1969_s8 = inlined_call_operand.vmem [shape: f32[64,256], index: 8, kind: input, shape index: {}]   ;;  %s1970_s9 = inlined_call_operand.vmem [shape: f32[1,256], index: 9, kind: input, shape index: {}]   ;;  %s1971_s10 = inlined_call_operand.vmem [shape: f32[256,64], index: 10, kind: input, shape index: {}]   ;;  %s1972_s11 = inlined_call_operand.vmem [shape: f32[1,64], index: 11, kind: input, shape index: {}]   ;;  %s1973_s12 = inlined_call_operand.hbm [shape: f32[2,8,64], index: 12, kind: output, shape index: {0}]   ;;  %s1974_s13 = inlined_call_operand.hbm [shape: f32[4,2,8,8], index: 13, kind: output, shape index: {1}]  }
   0x1   :  { %v1451_v0 = vld [vmem:[%s1961_s0] sm:$0xff]  ;;  %v1456_v1 = vld [vmem:[%s1961_s0 + $0x8] sm:$0xff] }
   0x2   :  { %v50_v2 = vsel %vm49_vm0, %v1451_v0, 0.0  ;;  %v53_v3 = vsel %vm49_vm0, %v1456_v1, 0.0 }
   0x3   :  { %51 = vadd.xlane.f32.xlu0 %v50_v2  ;;  %54 = vadd.xlane.f32.xlu1 %v53_v3 }
   0x4   :  { %20 = vsyncpa [#allocation5], 0  ;;  %v1365_v4 = vmov 64.0   ;;  %v125_v21 = vld [vmem:[%s1964_s3 + $0x70] sm:$0xff]  ;;  %v123_v22 = vld [vmem:[%s1964_s3 + $0x60] sm:$0xff]  ;;  %vm184_vm8 = vcmask 130048  }
   0x5   :  { %1255 = vrcp.f32 %v1365_v4  ;;  %141 = vmatpush.msra.mxu1 %v125_v21  ;;  %v121_v23 = vld [vmem:[%s1964_s3 + $0x50] sm:$0xff]  ;;  %v119_v24 = vld [vmem:[%s1964_s3 + $0x40] sm:$0xff]  ;;  %v126_v29 = vld [vmem:[%s1964_s3 + $0x78] sm:$0xff]  ;;  %vm238_vm9 = vcmask 64512   ;;  %s1368_s28 = smov 48   ;;  %s1369_s0 = smov 96  }
   0x6   :  { %v117_v25 = vld [vmem:[%s1964_s3 + $0x30] sm:$0xff]  ;;  %v115_v26 = vld [vmem:[%s1964_s3 + $0x20] sm:$0xff]  ;;  %v124_v30 = vld [vmem:[%s1964_s3 + $0x68] sm:$0xff]  ;;  %s1370_s29 = smov 32   ;;  %s1371_s30 = smov 16   ;;  %vm736_vm10 = vcmask 261120  }
   0x7   :  { %142 = vmatpush.msra.mxu1 %v123_v22  ;;  %v113_v27 = vld [vmem:[%s1964_s3 + $0x10] sm:$0xff]  ;;  %v111_v28 = vld [vmem:[%s1964_s3] sm:$0xff]  ;;  %v122_v31 = vld [vmem:[%s1964_s3 + $0x58] sm:$0xff]  ;;  %s1372_s14 = smov 80   ;;  %vm739_vm11 = vcmask 392192  }
   0x8   :  { %v120_v36 = vld [vmem:[%s1964_s3 + $0x48] sm:$0xff]  ;;  %v118_v39 = vld [vmem:[%s1964_s3 + $0x38] sm:$0xff]  ;;  %v1249_v55 = vld [vmem:[%s1962_s1] ss:$0 sm:$0xff]  ;;  %s1366_s1 = smov 64  }
   0x9   :  { %143 = vmatpush.msra.mxu1 %v121_v23  ;;  %v116_v40 = vld [vmem:[%s1964_s3 + $0x28] sm:$0xff]  ;;  %v114_v41 = vld [vmem:[%s1964_s3 + $0x18] sm:$0xff]  ;;  %v1250_v59 = vld [vmem:[%s1963_s2] ss:$0 sm:$0xff]  ;;  %s1367_s2 = smov 112  }
   0xa   :  { %v112_v42 = vld [vmem:[%s1964_s3 + $0x8] sm:$0xff] }
   0xb   :  { %v1256_v5 = vpop.eup %1255  ;;  %144 = vmatpush.msra.mxu1 %v119_v24 }
   0xc   :  { %v57_v6 = vmul.f32 64.0, %v1256_v5  ;;  %vm61_vm1 = vweird.f32 %v1256_v5 }
   0xd   :  { %145 = vmatpush.msra.mxu1 %v117_v25 }
   0xe   :  { %v58_v7 = vsub.f32 1.0, %v57_v6 }
   0xf   :  { %146 = vmatpush.msra.mxu1 %v115_v26 }
  0x10   :  { %v59_v8 = vmul.f32 %v1256_v5, %v58_v7 }
  0x11   :  { %147 = vmatpush.msra.mxu1 %v113_v27 }
  0x12   :  { %v60_v9 = vadd.f32 %v1256_v5, %v59_v8 }
  0x13   :  { %148 = vmatpush.msra.mxu1 %v111_v28 }
  0x14   :  { %v1462_v10 = vsel %vm61_vm1, %v1256_v5, %v60_v9 }
  0x15   :  { %164 = vmatpush.msrb.mxu1 %v126_v29 }
  0x17   :  { %165 = vmatpush.msrb.mxu1 %v124_v30 }
  0x19   :  { %166 = vmatpush.msrb.mxu1 %v122_v31 }
  0x1b   :  { %167 = vmatpush.msrb.mxu1 %v120_v36 }
  0x1d   :  { %168 = vmatpush.msrb.mxu1 %v118_v39 }
  0x1f   :  { %169 = vmatpush.msrb.mxu1 %v116_v40 }
  0x21   :  { %170 = vmatpush.msrb.mxu1 %v114_v41 }
  0x23   :  { %171 = vmatpush.msrb.mxu1 %v112_v42 }
  0x76   :  { %v52_v11 = vpop.xlane.xlu0 %51  ;;  %v55_v12 = vpop.xlane.xlu1 %54 }
  0x77   :  { %v63_v13 = vmul.f32 %v1462_v10, %v52_v11  ;;  %v64_v14 = vmul.f32 %v1462_v10, %v55_v12 }
  0x79   :  { %v1467_v15 = vsub.f32 %v1451_v0, %v63_v13  ;;  %v1470_v16 = vsub.f32 %v1456_v1, %v64_v14 }
  0x7b   :  { %v67_v17 = vmul.f32 %v1467_v15, %v1467_v15  ;;  %v68_v18 = vmul.f32 %v1470_v16, %v1470_v16 }
  0x7d   :  { %v69_v19 = vsel %vm49_vm0, %v67_v17, 0.0  ;;  %v72_v20 = vsel %vm49_vm0, %v68_v18, 0.0 }
  0x7e   :  { %70 = vadd.xlane.f32.xlu0 %v69_v19  ;;  %73 = vadd.xlane.f32.xlu2 %v72_v20 }
  0xf1   :  { %v71_v32 = vpop.xlane.xlu0 %70  ;;  %v74_v33 = vpop.xlane.xlu2 %73 }
  0xf2   :  { %v75_v34 = vmul.f32 %v71_v32, %v1462_v10  ;;  %v76_v35 = vmul.f32 %v74_v33, %v1462_v10 }
  0xf4   :  { %v77_v37 = vadd.f32 1e-05, %v75_v34  ;;  %v78_v38 = vadd.f32 1e-05, %v76_v35 }
  0xf6   :  { %1257 = vrsqrt.f32 %v77_v37  ;;  %vm95_vm2 = vweird.f32 %v78_v38  ;;  %vm85_vm5 = vweird.f32 %v77_v37 }
  0xf7   :  { %1259 = vrsqrt.f32 %v78_v38 }
  0xfc   :  { %v1258_v43 = vpop.eup %1257 }
  0xfd   :  { %v1260_v44 = vpop.eup %1259  ;;  %v80_v45 = vmul.f32 %v1258_v43, %v77_v37  ;;  %vm86_vm4 = vweird.f32 %v1258_v43 }
  0xfe   :  { %v90_v46 = vmul.f32 %v1260_v44, %v78_v38  ;;  %vm96_vm3 = vweird.f32 %v1260_v44  ;;  %vm87_vm7 = vmor %vm85_vm5, %vm86_vm4 }
  0xff   :  { %v81_v47 = vmul.f32 %v1258_v43, %v80_v45  ;;  %vm97_vm6 = vmor %vm95_vm2, %vm96_vm3 }
 0x100   :  { %v91_v48 = vmul.f32 %v1260_v44, %v90_v46 }
 0x101   :  { %v82_v49 = vmul.f32 0.5, %v81_v47 }
 0x102   :  { %v92_v50 = vmul.f32 0.5, %v91_v48 }
 0x103   :  { %v83_v51 = vsub.f32 1.5, %v82_v49 }
 0x104   :  { %v93_v52 = vsub.f32 1.5, %v92_v50 }
 0x105   :  { %v84_v53 = vmul.f32 %v1258_v43, %v83_v51 }
 0x106   :  { %v94_v54 = vmul.f32 %v1260_v44, %v93_v52 }
 0x107   :  { %v88_v56 = vsel %vm87_vm7, %v1258_v43, %v84_v53 }
 0x108   :  { %v98_v57 = vsel %vm97_vm6, %v1260_v44, %v94_v54  ;;  %v99_v58 = vmul.f32 %v88_v56, %v1467_v15 }
 0x109   :  { %v100_v61 = vmul.f32 %v98_v57, %v1470_v16 }
 0x10a   :  { %v104_v60 = vmul.f32 %v1249_v55, %v99_v58 }
 0x10b   :  { %v105_v63 = vmul.f32 %v1249_v55, %v100_v61 }
 0x10c   :  { %v109_v62 = vadd.f32 %v1250_v59, %v104_v60 }
 0x10d   :  { %v110_v2 = vadd.f32 %v1250_v59, %v105_v63 }
 0x10e   :  { %1197 = vmatmul.msk.f32.vlgmr.msra.gmra.mxu1 %vm49_vm0, %v109_v62 }
 0x116   :  { %1198 = vmatmul.msk.f32.gmra.mxu1 %vm49_vm0, %v110_v2 }
 0x11e   :  { %1199 = vmatmul.msk.f32.vlgmr.msrb.gmra.mxu1 %vm49_vm0, %v109_v62 }
 0x126   :  { %1200 = vmatmul.msk.f32.gmra.mxu1 %vm49_vm0, %v110_v2 }
 0x18b   :  { %v1540_v3 = vpop.f32.mrf.mxu1 }
 0x18c   :  { %182 = vrot.lane.b32.xlu1 %v1540_v3, %s1366_s1  ;;  %v1544_v4 = vmul.f32 0.25, %v1540_v3 }
 0x193   :  { %v153_v5 = vpop.f32.mrf.mxu1 }
 0x194   :  { %309 = vrot.lane.b32.xlu1 %v1544_v4, %s1367_s2  ;;  %v180_v16 = vmul.f32 0.25, %v153_v5 }
 0x19b   :  { %v1548_v6 = vpop.f32.mrf.mxu1 }
 0x1a3   :  { %v1550_v7 = vpop.f32.mrf.mxu1 }
 0x1a4   :  { %304 = vmatpush.msra.mxu3 %v1550_v7  ;;  %v1244_v63 = vpack.i.bf16 %v1550_v7, %v1548_v6 }
 0x1fe   :  { %v183_v8 = vpop.permute.xlu1 %182 }
 0x1ff   :  { %1201 = vmatpush.xpose.msk.msra.mxu2 %vm184_vm8, %v183_v8 }
 0x202   :  { %1202 = vmatmul.msk.f32.vlgmr.msra.gmra.mxu2 %vm184_vm8, %v1544_v4 }
 0x203   :  { %281 = vmatpush.msrb.mxu2 %v1548_v6 }
 0x206   :  { %v310_v25 = vpop.permute.xlu1 %309 }
 0x285   :  { %v207_v9 = vpop.f32.mrf.mxu2 }
 0x286   :  { %v239_v11 = vsel %vm238_vm9, %v207_v9, -inf }
 0x287   :  { %240 = vmax.xlane.f32.xlu2 %v239_v11 }
 0x29f   :  { %211 = vrot.lane.b32.xlu2 %v153_v5, %s1366_s1 }
 0x2fa   :  { %v241_v12 = vpop.xlane.xlu2 %240 }
 0x2fb   :  { %v245_v13 = vsub.f32 %v207_v9, %v241_v12 }
 0x2fd   :  { %v247_v14 = vmul.f32 1.442695, %v245_v13 }
 0x2ff   :  { %1261 = vpow2.f32 %v247_v14 }
 0x302   :  { %v212_v15 = vpop.permute.xlu2 %211 }
 0x303   :  { %1203 = vmatpush.xpose.msk.msra.mxu0 %vm184_vm8, %v212_v15 }
 0x305   :  { %v1262_v17 = vpop.eup %1261 }
 0x306   :  { %1204 = vmatmul.msk.f32.vlgmr.msra.gmra.mxu0 %vm184_vm8, %v180_v16  ;;  %v251_v18 = vsel %vm238_vm9, %v1262_v17, 0.0 }
 0x307   :  { %252 = vadd.xlane.f32.xlu0 %v251_v18 }
 0x31b   :  { %311 = vrot.lane.b32.xlu0 %v1540_v3, %s1368_s28 }
 0x37a   :  { %v253_v19 = vpop.xlane.xlu0 %252 }
 0x37b   :  { %1263 = vrcp.f32 %v253_v19 }
 0x381   :  { %v1264_v20 = vpop.eup %1263 }
 0x382   :  { %v259_v21 = vmul.f32 %v1264_v20, %v1262_v17 }
 0x383   :  { %v235_v22 = vpop.f32.mrf.mxu0 }
 0x384   :  { %261 = vst.msk [vmem:[#allocation4] sm:$0xff] %vm238_vm9, %v259_v21  ;;  %1205 = vmatmul.msk.f32.vlgmr.msrb.gmra.mxu2 %vm238_vm9, %v259_v21  ;;  %v242_v23 = vsel %vm238_vm9, %v235_v22, -inf }
 0x385   :  { %243 = vmax.xlane.f32.xlu2 %v242_v23 }
 0x38d   :  { %v312_v24 = vpop.permute.xlu0 %311 }
 0x38e   :  { %1207 = vmatpush.xpose.msk.msra.mxu2 %vm184_vm8, %v312_v24 }
 0x391   :  { %1208 = vmatmul.msk.f32.vlgmr.msra.gmra.mxu2 %vm184_vm8, %v310_v25 }
 0x39d   :  { %337 = vrot.lane.b32.xlu2 %v180_v16, %s1367_s2 }
 0x3a5   :  { %444 = vrot.lane.b32.xlu2 %v1544_v4, %s1369_s0 }
 0x3f8   :  { %v244_v26 = vpop.xlane.xlu2 %243 }
 0x3f9   :  { %v246_v27 = vsub.f32 %v235_v22, %v244_v26 }
 0x3fb   :  { %v249_v28 = vmul.f32 1.442695, %v246_v27 }
 0x3fd   :  { %1265 = vpow2.f32 %v249_v28 }
 0x400   :  { %v338_v40 = vpop.permute.xlu2 %337 }
 0x403   :  { %v1266_v29 = vpop.eup %1265 }
 0x404   :  { %v254_v30 = vsel %vm238_vm9, %v1266_v29, 0.0 }
 0x405   :  { %255 = vadd.xlane.f32.xlu0 %v254_v30 }
 0x407   :  { %v1572_v31 = vpop.f32.mrf.mxu2 }
 0x408   :  { %v445_v45 = vpop.permute.xlu2 %444 }
 0x414   :  { %v334_v32 = vpop.f32.mrf.mxu2 }
 0x415   :  { %v365_v33 = vsel %vm238_vm9, %v334_v32, -inf }
 0x416   :  { %366 = vmax.xlane.f32.xlu1 %v365_v33 }
 0x419   :  { %391 = vrot.lane.b32.xlu0 %v1548_v6, %s1367_s2 }
 0x421   :  { %446 = vrot.lane.b32.xlu0 %v1540_v3, %s1370_s29 }
 0x429   :  { %472 = vrot.lane.b32.xlu0 %v180_v16, %s1369_s0 }
 0x42f   :  { %339 = vrot.lane.b32.xlu1 %v153_v5, %s1368_s28 }
 0x431   :  { %607 = vrot.lane.b32.xlu0 %v153_v5, %s1371_s30 }
 0x437   :  { %474 = vrot.lane.b32.xlu1 %v153_v5, %s1370_s29 }
 0x43f   :  { %579 = vrot.lane.b32.xlu1 %v1540_v3, %s1371_s30 }
 0x447   :  { %605 = vrot.lane.b32.xlu1 %v180_v16, %s1372_s14 }
 0x478   :  { %v256_v34 = vpop.xlane.xlu0 %255 }
 0x479   :  { %1267 = vrcp.f32 %v256_v34 }
 0x47f   :  { %v1268_v35 = vpop.eup %1267 }
 0x480   :  { %v260_v36 = vmul.f32 %v1268_v35, %v1266_v29 }
 0x482   :  { %262 = vst.msk [vmem:[#allocation4 + $0x8] sm:$0xff] %vm238_vm9, %v260_v36  ;;  %1206 = vmatmul.msk.f32.vlgmr.msra.gmra.mxu3 %vm238_vm9, %v260_v36 }
 0x489   :  { %v367_v37 = vpop.xlane.xlu1 %366 }
 0x48a   :  { %v371_v38 = vsub.f32 %v334_v32, %v367_v37 }
 0x48b   :  { %v392_v39 = vpop.permute.xlu0 %391 }
 0x48c   :  { %v373_v41 = vmul.f32 1.442695, %v371_v38  ;;  %412 = vmatpush.msrb.mxu2 %v392_v39 }
 0x48e   :  { %1269 = vpow2.f32 %v373_v41 }
 0x493   :  { %v447_v42 = vpop.permute.xlu0 %446 }
 0x494   :  { %v1270_v43 = vpop.eup %1269  ;;  %1213 = vmatpush.xpose.msk.msrb.mxu0 %vm184_vm8, %v447_v42 }
 0x495   :  { %v377_v44 = vsel %vm238_vm9, %v1270_v43, 0.0 }
 0x496   :  { %378 = vadd.xlane.f32.xlu2 %v377_v44 }
 0x497   :  { %1214 = vmatmul.msk.f32.vlgmr.msrb.gmra.mxu0 %vm184_vm8, %v445_v45 }
 0x49b   :  { %v473_v46 = vpop.permute.xlu0 %472 }
 0x4a1   :  { %v340_v47 = vpop.permute.xlu1 %339 }
 0x4a2   :  { %1209 = vmatpush.xpose.msk.msrb.mxu3 %vm184_vm8, %v340_v47 }
 0x4a3   :  { %v608_v48 = vpop.permute.xlu0 %607 }
 0x4a4   :  { %1221 = vmatpush.xpose.msk.msra.mxu1 %vm184_vm8, %v608_v48 }
 0x4a5   :  { %1210 = vmatmul.msk.f32.vlgmr.msrb.gmra.mxu3 %vm184_vm8, %v338_v40 }
 0x4a9   :  { %v475_v49 = vpop.permute.xlu1 %474 }
 0x4aa   :  { %1215 = vmatpush.xpose.msk.msra.mxu2 %vm184_vm8, %v475_v49 }
 0x4ae   :  { %577 = vrot.lane.b32.xlu2 %v1544_v4, %s1372_s14 }
 0x4b1   :  { %v580_v50 = vpop.permute.xlu1 %579 }
 0x4b2   :  { %1219 = vmatpush.xpose.msk.msra.mxu0 %vm184_vm8, %v580_v50 }
 0x4b9   :  { %v606_v51 = vpop.permute.xlu1 %605 }
 0x4ba   :  { %1222 = vmatmul.msk.f32.vlgmr.msra.gmra.mxu1 %vm184_vm8, %v606_v51 }
 0x505   :  { %v1604_v58 = vpop.f32.mrf.mxu3 }
 0x509   :  { %v379_v52 = vpop.xlane.xlu2 %378 }
 0x50a   :  { %1271 = vrcp.f32 %v379_v52 }
 0x510   :  { %v1272_v53 = vpop.eup %1271 }
 0x511   :  { %v385_v54 = vmul.f32 %v1272_v53, %v1270_v43  ;;  %v578_v55 = vpop.permute.xlu2 %577 }
 0x512   :  { %1220 = vmatmul.msk.f32.vlgmr.msra.gmra.mxu0 %vm184_vm8, %v578_v55 }
 0x513   :  { %388 = vst.msk [vmem:[#allocation4 + $0x10] sm:$0xff] %vm238_vm9, %v385_v54  ;;  %1211 = vmatmul.msk.f32.vlgmr.msrb.gmra.mxu2 %vm238_vm9, %v385_v54 }
 0x514   :  { %v469_v56 = vpop.f32.mrf.mxu0 }
 0x515   :  { %v500_v57 = vsel %vm238_vm9, %v469_v56, -inf }
 0x516   :  { %501 = vmax.xlane.f32.xlu0 %v500_v57  ;;  %v749_v57 = vld [vmem:[%s1965_s4 + $0x38] sm:$0xff] }
 0x517   :  { %768 = vmatpush.msrb.mxu0 %v749_v57 }
 0x51b   :  { %1216 = vmatmul.msk.f32.vlgmr.msra.gmra.mxu2 %vm184_vm8, %v473_v46 }
 0x528   :  { %v362_v59 = vpop.f32.mrf.mxu3 }
 0x529   :  { %v368_v60 = vsel %vm238_vm9, %v362_v59, -inf }
 0x52a   :  { %369 = vmax.xlane.f32.xlu2 %v368_v60  ;;  %v747_v60 = vld [vmem:[%s1965_s4 + $0x28] sm:$0xff] }
 0x537   :  { %v630_v61 = vpop.f32.mrf.mxu1 }
 0x538   :  { %v636_v62 = vsel %vm238_vm9, %v630_v61, -inf }
 0x539   :  { %637 = vmax.xlane.f32.xlu0 %v636_v62  ;;  %v745_v62 = vld [vmem:[%s1965_s4 + $0x18] sm:$0xff] }
 0x54d   :  { %1245 = vrot.lane.b32.xlu0 %v1244_v63, %s1369_s0  ;;  %v744_v63 = vld [vmem:[%s1965_s4 + $0x10] sm:$0xff]  ;;  %s1180_s0 = sshll.u32 %s1974_s13, 4  ;;  %s1377_s13 = smov [#allocation2]   ;;  %s1181_s0 = int_to_ptr.hbm [resolvable:$true] %s1180_s0 }
 0x54e   :  { %s1165_s16 = sshll.u32 %s1377_s13, 4  ;;  %s1166_s16 = int_to_ptr.vmem [resolvable:$true] %s1165_s16 }
 0x589   :  { %v502_v2 = vpop.xlane.xlu0 %501 }
 0x58a   :  { %v506_v3 = vsub.f32 %v469_v56, %v502_v2  ;;  %v743_v2 = vld [vmem:[%s1965_s4 + $0x8] sm:$0xff] }
 0x58c   :  { %v508_v4 = vmul.f32 1.442695, %v506_v3 }
 0x58e   :  { %1273 = vpow2.f32 %v508_v4 }
 0x58f   :  { %v602_v5 = vpop.f32.mrf.mxu0 }
 0x590   :  { %v633_v8 = vsel %vm238_vm9, %v602_v5, -inf }
 0x591   :  { %634 = vmax.xlane.f32.xlu2 %v633_v8  ;;  %v742_v8 = vld [vmem:[%s1965_s4] sm:$0xff] }
 0x594   :  { %v1274_v9 = vpop.eup %1273 }
 0x595   :  { %v512_v12 = vsel %vm238_vm9, %v1274_v9, 0.0 }
 0x596   :  { %v414_v11 = vpop.f32.mrf.mxu2 }
 0x599   :  { %513 = vadd.xlane.f32.xlu2 %v512_v12 }
 0x59d   :  { %v370_v13 = vpop.xlane.xlu2 %369 }
 0x59e   :  { %v372_v14 = vsub.f32 %v362_v59, %v370_v13  ;;  %v497_v15 = vpop.f32.mrf.mxu2  ;;  %v748_v59 = vld [vmem:[%s1965_s4 + $0x30] sm:$0xff] }
 0x59f   :  { %v503_v16 = vsel %vm238_vm9, %v497_v15, -inf  ;;  %769 = vmatpush.msrb.mxu0 %v748_v59 }
 0x5a0   :  { %v375_v17 = vmul.f32 1.442695, %v372_v14  ;;  %504 = vmax.xlane.f32.xlu1 %v503_v16 }
 0x5a1   :  { %770 = vmatpush.msrb.mxu0 %v747_v60 }
 0x5a2   :  { %1275 = vpow2.f32 %v375_v17 }
 0x5a8   :  { %v1276_v18 = vpop.eup %1275 }
 0x5a9   :  { %v380_v19 = vsel %vm238_vm9, %v1276_v18, 0.0 }
 0x5aa   :  { %381 = vadd.xlane.f32.xlu1 %v380_v19 }
 0x5ac   :  { %v638_v20 = vpop.xlane.xlu0 %637 }
 0x5ad   :  { %v640_v25 = vsub.f32 %v630_v61, %v638_v20  ;;  %v746_v61 = vld [vmem:[%s1965_s4 + $0x20] sm:$0xff] }
 0x5ae   :  { %771 = vmatpush.msrb.mxu0 %v746_v61 }
 0x5af   :  { %v643_v27 = vmul.f32 1.442695, %v640_v25 }
 0x5b0   :  { %772 = vmatpush.msrb.mxu0 %v745_v62 }
 0x5b1   :  { %418 = vrot.lane.b32.xlu2 %v1550_v7, %s1367_s2 }
 0x5b2   :  { %773 = vmatpush.msrb.mxu0 %v744_v63 }
 0x5b4   :  { %774 = vmatpush.msrb.mxu0 %v743_v2 }
 0x5b6   :  { %775 = vmatpush.msrb.mxu0 %v742_v8  ;;  %v1253_v8 = vld [vmem:[%s1968_s7] ss:$0 sm:$0xff] }
 0x5b9   :  { %712 = vrot.lane.b32.xlu2 %v414_v11, %s1371_s30 }
 0x5bf   :  { %v1246_v21 = vpop.permute.xlu0 %1245 }
 0x5c0   :  { %v1247_v22 = vunpack.i.l.bf16 %v1246_v21  ;;  %v1248_v34 = vunpack.i.h.bf16 %v1246_v21 }
 0x5c2   :  { %546 = vmatpush.msrb.mxu2 %v1247_v22  ;;  %v1251_v22 = vld [vmem:[%s1966_s5] ss:$0 sm:$0xff] }
 0x604   :  { %v635_v23 = vpop.xlane.xlu2 %634 }
 0x605   :  { %v639_v24 = vsub.f32 %v602_v5, %v635_v23 }
 0x607   :  { %v641_v26 = vmul.f32 1.442695, %v639_v24 }
 0x609   :  { %1277 = vpow2.f32 %v641_v26 }
 0x60c   :  { %v514_v28 = vpop.xlane.xlu2 %513 }
 0x60d   :  { %1279 = vrcp.f32 %v514_v28 }
 0x60e   :  { %1281 = vpow2.f32 %v643_v27 }
 0x60f   :  { %v1278_v29 = vpop.eup %1277 }
 0x610   :  { %v645_v30 = vsel %vm238_vm9, %v1278_v29, 0.0 }
 0x611   :  { %646 = vadd.xlane.f32.xlu1 %v645_v30 }
 0x613   :  { %v1280_v32 = vpop.eup %1279  ;;  %v505_v33 = vpop.xlane.xlu1 %504 }
 0x614   :  { %v520_v35 = vmul.f32 %v1280_v32, %v1274_v9  ;;  %v507_v36 = vsub.f32 %v497_v15, %v505_v33  ;;  %v419_v37 = vpop.permute.xlu2 %418  ;;  %v1282_v38 = vpop.eup %1281 }
 0x615   :  { %439 = vmatpush.msra.mxu3 %v419_v37  ;;  %v648_v40 = vsel %vm238_vm9, %v1282_v38, 0.0 }
 0x616   :  { %523 = vst.msk [vmem:[#allocation4 + $0x20] sm:$0xff] %vm238_vm9, %v520_v35  ;;  %v510_v39 = vmul.f32 1.442695, %v507_v36  ;;  %1217 = vmatmul.msk.f32.vlgmr.msrb.gmra.mxu2 %vm238_vm9, %v520_v35 }
 0x617   :  { %572 = vmatpush.msrb.mxu3 %v1248_v34 }
 0x618   :  { %1283 = vpow2.f32 %v510_v39  ;;  %v856_v39 = vld [vmem:[%s1969_s8 + $0x78] sm:$0xff] }
 0x619   :  { %649 = vadd.xlane.f32.xlu1 %v648_v40  ;;  %v853_v40 = vld [vmem:[%s1969_s8 + $0x60] sm:$0xff] }
 0x61c   :  { %v713_v9 = vpop.permute.xlu2 %712 }
 0x61d   :  { %v382_v41 = vpop.xlane.xlu1 %381  ;;  %v734_v12 = vsel %vm184_vm8, %v1572_v31, %v713_v9 }
 0x61e   :  { %v1284_v42 = vpop.eup %1283  ;;  %1285 = vrcp.f32 %v382_v41  ;;  %v854_v41 = vld [vmem:[%s1969_s8 + $0x68] sm:$0xff] }
 0x61f   :  { %v515_v43 = vsel %vm238_vm9, %v1284_v42, 0.0 }
 0x620   :  { %516 = vadd.xlane.f32.xlu0 %v515_v43  ;;  %v852_v43 = vld [vmem:[%s1969_s8 + $0x58] sm:$0xff] }
 0x624   :  { %v1286_v44 = vpop.eup %1285 }
 0x625   :  { %v386_v45 = vmul.f32 %v1286_v44, %v1276_v18  ;;  %v849_v44 = vld [vmem:[%s1969_s8 + $0x40] sm:$0xff] }
 0x627   :  { %389 = vst.msk [vmem:[#allocation4 + $0x18] sm:$0xff] %vm238_vm9, %v386_v45  ;;  %1212 = vmatmul.msk.f32.vlgmr.msra.gmra.mxu3 %vm238_vm9, %v386_v45  ;;  %v850_v45 = vld [vmem:[%s1969_s8 + $0x48] sm:$0xff] }
 0x632   :  { %658 = vrot.lane.b32.xlu1 %v1548_v6, %s1372_s14 }
 0x634   :  { %684 = vrot.lane.b32.xlu0 %v1550_v7, %s1372_s14 }
 0x684   :  { %v647_v46 = vpop.xlane.xlu1 %646 }
 0x685   :  { %1287 = vrcp.f32 %v647_v46  ;;  %v847_v46 = vld [vmem:[%s1969_s8 + $0x30] sm:$0xff] }
 0x68b   :  { %v1288_v47 = vpop.eup %1287 }
 0x68c   :  { %v653_v48 = vmul.f32 %v1288_v47, %v1278_v29  ;;  %v650_v49 = vpop.xlane.xlu1 %649  ;;  %v848_v47 = vld [vmem:[%s1969_s8 + $0x38] sm:$0xff] }
 0x68d   :  { %1289 = vrcp.f32 %v650_v49  ;;  %v846_v49 = vld [vmem:[%s1969_s8 + $0x28] sm:$0xff] }
 0x68e   :  { %656 = vst.msk [vmem:[#allocation4 + $0x30] sm:$0xff] %vm238_vm9, %v653_v48 }
 0x693   :  { %v1290_v50 = vpop.eup %1289  ;;  %v517_v51 = vpop.xlane.xlu0 %516 }
 0x694   :  { %v654_v52 = vmul.f32 %v1290_v50, %v1282_v38  ;;  %1291 = vrcp.f32 %v517_v51  ;;  %v855_v38 = vld [vmem:[%s1969_s8 + $0x70] sm:$0xff]  ;;  %v844_v51 = vld [vmem:[%s1969_s8 + $0x18] sm:$0xff] }
 0x695   :  { %877 = vmatpush.msrb.mxu1 %v855_v38  ;;  %v843_v50 = vld [vmem:[%s1969_s8 + $0x10] sm:$0xff]  ;;  %v1103_v38 = vld [vmem:[%s1971_s10 + $0xe0] sm:$0xff] }
 0x696   :  { %657 = vst.msk [vmem:[#allocation4 + $0x38] sm:$0xff] %vm238_vm9, %v654_v52 }
 0x697   :  { %878 = vmatpush.msrb.mxu1 %v853_v40 }
 0x699   :  { %v548_v53 = vpop.f32.mrf.mxu2 }
 0x69a   :  { %v1292_v54 = vpop.eup %1291  ;;  %720 = vrot.lane.b32.xlu0 %v548_v53, %s1370_s29  ;;  %v842_v53 = vld [vmem:[%s1969_s8 + $0x8] sm:$0xff] }
 0x69b   :  { %v521_v6 = vmul.f32 %v1292_v54, %v1284_v42  ;;  %v851_v42 = vld [vmem:[%s1969_s8 + $0x50] sm:$0xff] }
 0x69c   :  { %879 = vmatpush.msrb.mxu1 %v851_v42  ;;  %v1102_v42 = vld [vmem:[%s1971_s10 + $0xd8] sm:$0xff] }
 0x69d   :  { %524 = vst.msk [vmem:[#allocation4 + $0x28] sm:$0xff] %vm238_vm9, %v521_v6  ;;  %1218 = vmatmul.msk.f32.vlgmr.msrb.gmra.mxu3 %vm238_vm9, %v521_v6 }
 0x69e   :  { %880 = vmatpush.msrb.mxu1 %v849_v44 }
 0x6a0   :  { %881 = vmatpush.msrb.mxu1 %v847_v46  ;;  %v1101_v46 = vld [vmem:[%s1971_s10 + $0xd0] sm:$0xff] }
 0x6a4   :  { %v659_v7 = vpop.permute.xlu1 %658 }
 0x6a5   :  { %679 = vmatpush.msra.mxu2 %v659_v7 }
 0x6a6   :  { %v685_v55 = vpop.permute.xlu0 %684  ;;  %1223 = vmatmul.msk.f32.vlgmr.msra.gmra.mxu2 %vm238_vm9, %v653_v48  ;;  %v845_v48 = vld [vmem:[%s1969_s8 + $0x20] sm:$0xff] }
 0x6a7   :  { %705 = vmatpush.msra.mxu3 %v685_v55  ;;  %900 = vmatpush.msrb.mxu2 %v856_v39 }
 0x6a8   :  { %1224 = vmatmul.msk.f32.vlgmr.msra.gmra.mxu3 %vm238_vm9, %v654_v52  ;;  %882 = vmatpush.msrb.mxu1 %v845_v48  ;;  %v841_v52 = vld [vmem:[%s1969_s8] sm:$0xff]  ;;  %v1081_v48 = vld [vmem:[%s1971_s10 + $0x30] sm:$0xff]  ;;  %s1167_s8 = sshll.u32 %s1973_s12, 4  ;;  %s1168_s8 = int_to_ptr.hbm [resolvable:$true] %s1167_s8 }
 0x6a9   :  { %901 = vmatpush.msrb.mxu2 %v854_v41  ;;  %v1083_v41 = vld [vmem:[%s1971_s10 + $0x40] sm:$0xff] }
 0x6aa   :  { %v441_v56 = vpop.f32.mrf.mxu3  ;;  %883 = vmatpush.msrb.mxu1 %v843_v50 }
 0x6ab   :  { %714 = vrot.lane.b32.xlu1 %v441_v56, %s1371_s30  ;;  %902 = vmatpush.msrb.mxu2 %v852_v43  ;;  %s1376_s30 = smov 8  }
 0x6ac   :  { %884 = vmatpush.msrb.mxu1 %v841_v52  ;;  %v1099_v52 = vld [vmem:[%s1971_s10 + $0xc0] sm:$0xff] }
 0x6ad   :  { %903 = vmatpush.msrb.mxu2 %v850_v45  ;;  %v1082_v45 = vld [vmem:[%s1971_s10 + $0x38] sm:$0xff] }
 0x6af   :  { %904 = vmatpush.msrb.mxu2 %v848_v47 }
 0x6b1   :  { %905 = vmatpush.msrb.mxu2 %v846_v49  ;;  %v1100_v49 = vld [vmem:[%s1971_s10 + $0xc8] sm:$0xff] }
 0x6b3   :  { %906 = vmatpush.msrb.mxu2 %v844_v51  ;;  %v1080_v51 = vld [vmem:[%s1971_s10 + $0x28] sm:$0xff] }
 0x6b5   :  { %907 = vmatpush.msrb.mxu2 %v842_v53 }
 0x70c   :  { %v721_v11 = vpop.permute.xlu0 %720 }
 0x70d   :  { %v737_v13 = vsel %vm736_vm10, %v734_v12, %v721_v11 }
 0x71d   :  { %v715_v16 = vpop.permute.xlu1 %714 }
 0x71e   :  { %v735_v17 = vsel %vm184_vm8, %v1604_v58, %v715_v16 }
 0x720   :  { %v574_v3 = vpop.f32.mrf.mxu3 }
 0x721   :  { %722 = vrot.lane.b32.xlu0 %v574_v3, %s1370_s29  ;;  %v1252_v3 = vld [vmem:[%s1967_s6] ss:$0 sm:$0xff]  ;;  %s1375_s29 = smov 128  }
 0x729   :  { %v681_v4 = vpop.f32.mrf.mxu2 }
 0x72a   :  { %728 = vrot.lane.b32.xlu2 %v681_v4, %s1368_s28 }
 0x72b   :  { %v707_v5 = vpop.f32.mrf.mxu3 }
 0x732   :  { %730 = vrot.lane.b32.xlu2 %v707_v5, %s1368_s28 }
 0x784   :  { %v729_v14 = vpop.permute.xlu2 %728 }
 0x785   :  { %v740_v15 = vsel %vm739_vm11, %v737_v13, %v729_v14 }
 0x786   :  { %1225 = vmatmul.msk.f32.vlgmr.msrb.gmra.mxu0 %vm49_vm0, %v740_v15 }
 0x78c   :  { %v731_v19 = vpop.permute.xlu2 %730 }
 0x793   :  { %v723_v18 = vpop.permute.xlu0 %722 }
 0x794   :  { %v738_v20 = vsel %vm736_vm10, %v735_v17, %v723_v18 }
 0x795   :  { %v741_v21 = vsel %vm739_vm11, %v738_v20, %v731_v19 }
 0x796   :  { %1226 = vmatmul.msk.f32.gmra.mxu0 %vm49_vm0, %v741_v21  ;;  %v1757_v21 = vld [vmem:[%s1970_s9] sm:$0x3] }
 0x803   :  { %v777_v31 = vpop.f32.mrf.mxu0 }
 0x804   :  { %v778_v23 = vadd.f32 %v1251_v22, %v777_v31  ;;  %v1089_v31 = vld [vmem:[%s1971_s10 + $0x70] sm:$0xff] }
 0x806   :  { %v1674_v24 = vadd.f32 %v778_v23, %v1451_v0  ;;  %v859_v23 = vperm.slane %v1757_v21, 0 }
 0x808   :  { %v787_v25 = vsel %vm49_vm0, %v1674_v24, 0.0 }
 0x809   :  { %788 = vadd.xlane.f32.xlu1 %v787_v25  ;;  %v1088_v25 = vld [vmem:[%s1971_s10 + $0x68] sm:$0xff] }
 0x813   :  { %v780_v58 = vpop.f32.mrf.mxu0 }
 0x814   :  { %v781_v26 = vadd.f32 %v1251_v22, %v780_v58  ;;  %v1090_v22 = vld [vmem:[%s1971_s10 + $0x78] sm:$0xff] }
 0x815   :  { %1111 = vmatpush.msrb.mxu3 %v1090_v22 }
 0x816   :  { %v1679_v27 = vadd.f32 %v781_v26, %v1456_v1  ;;  %v1087_v26 = vld [vmem:[%s1971_s10 + $0x60] sm:$0xff] }
 0x817   :  { %1112 = vmatpush.msrb.mxu3 %v1089_v31  ;;  %v1093_v31 = vld [vmem:[%s1971_s10 + $0x90] sm:$0xff] }
 0x818   :  { %v790_v28 = vsel %vm49_vm0, %v1679_v27, 0.0 }
 0x819   :  { %791 = vadd.xlane.f32.xlu0 %v790_v28  ;;  %1113 = vmatpush.msrb.mxu3 %v1088_v25  ;;  %v1106_v28 = vld [vmem:[%s1971_s10 + $0xf8] sm:$0xff] }
 0x81a   :  { %1134 = vmatpush.msra.mxu0 %v1106_v28 }
 0x81b   :  { %1114 = vmatpush.msrb.mxu3 %v1087_v26 }
 0x87c   :  { %v789_v29 = vpop.xlane.xlu1 %788 }
 0x87d   :  { %v793_v30 = vmul.f32 %v789_v29, %v1462_v10 }
 0x87f   :  { %v795_v32 = vsub.f32 %v1674_v24, %v793_v30  ;;  %v1086_v30 = vld [vmem:[%s1971_s10 + $0x58] sm:$0xff] }
 0x880   :  { %1115 = vmatpush.msrb.mxu3 %v1086_v30 }
 0x881   :  { %v797_v0 = vmul.f32 %v795_v32, %v795_v32 }
 0x883   :  { %v799_v33 = vsel %vm49_vm0, %v797_v0, 0.0 }
 0x884   :  { %800 = vadd.xlane.f32.xlu2 %v799_v33  ;;  %v860_v33 = vperm.slane %v1757_v21, 1 }
 0x88c   :  { %v792_v34 = vpop.xlane.xlu0 %791 }
 0x88d   :  { %v794_v35 = vmul.f32 %v792_v34, %v1462_v10  ;;  %v1085_v34 = vld [vmem:[%s1971_s10 + $0x50] sm:$0xff] }
 0x88e   :  { %1116 = vmatpush.msrb.mxu3 %v1085_v34 }
 0x88f   :  { %v1688_v36 = vsub.f32 %v1679_v27, %v794_v35  ;;  %v1104_v35 = vld [vmem:[%s1971_s10 + $0xe8] sm:$0xff] }
 0x891   :  { %v798_v1 = vmul.f32 %v1688_v36, %v1688_v36 }
 0x893   :  { %v802_v37 = vsel %vm49_vm0, %v798_v1, 0.0 }
 0x894   :  { %803 = vadd.xlane.f32.xlu1 %v802_v37  ;;  %v1084_v37 = vld [vmem:[%s1971_s10 + $0x48] sm:$0xff] }
 0x895   :  { %1117 = vmatpush.msrb.mxu3 %v1084_v37 }
 0x897   :  { %1118 = vmatpush.msrb.mxu3 %v1083_v41 }
 0x899   :  { %1119 = vmatpush.msrb.mxu3 %v1082_v45 }
 0x89b   :  { %1120 = vmatpush.msrb.mxu3 %v1081_v48 }
 0x89d   :  { %1121 = vmatpush.msrb.mxu3 %v1080_v51 }
 0x8f7   :  { %v801_v54 = vpop.xlane.xlu2 %800 }
 0x8f8   :  { %v805_v6 = vmul.f32 %v801_v54, %v1462_v10 }
 0x8fa   :  { %v807_v7 = vadd.f32 1e-05, %v805_v6  ;;  %v1079_v6 = vld [vmem:[%s1971_s10 + $0x20] sm:$0xff] }
 0x8fb   :  { %1122 = vmatpush.msrb.mxu3 %v1079_v6 }
 0x8fc   :  { %1293 = vrsqrt.f32 %v807_v7  ;;  %vm815_vm13 = vweird.f32 %v807_v7 }
 0x902   :  { %v1294_v55 = vpop.eup %1293 }
 0x903   :  { %v810_v56 = vmul.f32 %v1294_v55, %v807_v7  ;;  %vm816_vm12 = vweird.f32 %v1294_v55  ;;  %v1098_v7 = vld [vmem:[%s1971_s10 + $0xb8] sm:$0xff] }
 0x904   :  { %vm817_vm14 = vmor %vm815_vm13, %vm816_vm12 }
 0x905   :  { %v811_v57 = vmul.f32 %v1294_v55, %v810_v56 }
 0x907   :  { %v812_v59 = vmul.f32 0.5, %v811_v57  ;;  %v804_v60 = vpop.xlane.xlu1 %803 }
 0x908   :  { %v806_v61 = vmul.f32 %v804_v60, %v1462_v10  ;;  %v1097_v60 = vld [vmem:[%s1971_s10 + $0xb0] sm:$0xff] }
 0x909   :  { %v813_v62 = vsub.f32 1.5, %v812_v59  ;;  %v1078_v59 = vld [vmem:[%s1971_s10 + $0x18] sm:$0xff] }
 0x90a   :  { %v808_v63 = vadd.f32 1e-05, %v806_v61  ;;  %1123 = vmatpush.msrb.mxu3 %v1078_v59 }
 0x90b   :  { %v814_v2 = vmul.f32 %v1294_v55, %v813_v62 }
 0x90c   :  { %1295 = vrsqrt.f32 %v808_v63  ;;  %vm825_vm1 = vweird.f32 %v808_v63 }
 0x90d   :  { %v818_v4 = vsel %vm817_vm14, %v1294_v55, %v814_v2  ;;  %v1096_v2 = vld [vmem:[%s1971_s10 + $0xa8] sm:$0xff] }
 0x90e   :  { %v829_v5 = vmul.f32 %v818_v4, %v795_v32  ;;  %v1105_v32 = vld [vmem:[%s1971_s10 + $0xf0] sm:$0xff] }
 0x90f   :  { %1135 = vmatpush.msra.mxu0 %v1105_v32  ;;  %v1092_v32 = vld [vmem:[%s1971_s10 + $0x88] sm:$0xff] }
 0x910   :  { %v834_v9 = vmul.f32 %v1252_v3, %v829_v5 }
 0x911   :  { %1136 = vmatpush.msra.mxu0 %v1104_v35 }
 0x912   :  { %v1296_v11 = vpop.eup %1295  ;;  %v839_v10 = vadd.f32 %v1253_v8, %v834_v9 }
 0x913   :  { %v820_v12 = vmul.f32 %v1296_v11, %v808_v63  ;;  %vm826_vm15 = vweird.f32 %v1296_v11  ;;  %1137 = vmatpush.msra.mxu0 %v1103_v38  ;;  %v1077_v63 = vld [vmem:[%s1971_s10 + $0x10] sm:$0xff] }
 0x914   :  { %1227 = vmatmul.msk.f32.vlgmr.msrb.gmra.mxu1 %vm49_vm0, %v839_v10  ;;  %1229 = vmatmul.msk.f32.vlgmr.msrb.gmra.mxu2 %vm49_vm0, %v839_v10  ;;  %vm827_vm2 = vmor %vm825_vm1, %vm826_vm15  ;;  %v1095_v10 = vld [vmem:[%s1971_s10 + $0xa0] sm:$0xff] }
 0x915   :  { %v821_v13 = vmul.f32 %v1296_v11, %v820_v12  ;;  %1138 = vmatpush.msra.mxu0 %v1102_v42  ;;  %1124 = vmatpush.msrb.mxu3 %v1077_v63 }
 0x917   :  { %v822_v14 = vmul.f32 0.5, %v821_v13  ;;  %1139 = vmatpush.msra.mxu0 %v1101_v46 }
 0x919   :  { %v823_v15 = vsub.f32 1.5, %v822_v14  ;;  %1140 = vmatpush.msra.mxu0 %v1100_v49 }
 0x91b   :  { %v824_v16 = vmul.f32 %v1296_v11, %v823_v15  ;;  %1141 = vmatpush.msra.mxu0 %v1099_v52 }
 0x91d   :  { %v828_v17 = vsel %vm827_vm2, %v1296_v11, %v824_v16  ;;  %1142 = vmatpush.msra.mxu0 %v1098_v7  ;;  %v1076_v11 = vld [vmem:[%s1971_s10 + $0x8] sm:$0xff]  ;;  %v1075_v16 = vld [vmem:[%s1971_s10] sm:$0xff] }
 0x91e   :  { %v830_v18 = vmul.f32 %v828_v17, %v1688_v36  ;;  %1125 = vmatpush.msrb.mxu3 %v1076_v11  ;;  %v1094_v17 = vld [vmem:[%s1971_s10 + $0x98] sm:$0xff] }
 0x91f   :  { %1143 = vmatpush.msra.mxu0 %v1097_v60 }
 0x920   :  { %v835_v19 = vmul.f32 %v1252_v3, %v830_v18  ;;  %1126 = vmatpush.msrb.mxu3 %v1075_v16 }
 0x921   :  { %1144 = vmatpush.msra.mxu0 %v1096_v2 }
 0x922   :  { %v840_v20 = vadd.f32 %v1253_v8, %v835_v19 }
 0x923   :  { %1145 = vmatpush.msra.mxu0 %v1095_v10 }
 0x924   :  { %1228 = vmatmul.msk.f32.gmra.mxu1 %vm49_vm0, %v840_v20  ;;  %1230 = vmatmul.msk.f32.gmra.mxu2 %vm49_vm0, %v840_v20 }
 0x925   :  { %1146 = vmatpush.msra.mxu0 %v1094_v17 }
 0x927   :  { %1147 = vmatpush.msra.mxu0 %v1093_v31 }
 0x929   :  { %1148 = vmatpush.msra.mxu0 %v1092_v32 }
 0x991   :  { %v886_v58 = vpop.f32.mrf.mxu1 }
 0x992   :  { %v1775_v29 = vadd.f32 %v886_v58, %v859_v23 }
 0x994   :  { %v1784_v0 = vmul.f32 0.70710677, %v1775_v29 }
 0x996   :  { %v1794_v36 = vand.u32 2147483647, %v1784_v0  ;;  %vm923_vm12 = vcmp.ge.f32.partialorder %v1784_v0, 0.0 }
 0x997   :  { %v909_v1 = vpop.f32.mrf.mxu2 }
 0x998   :  { %v935_v39 = vmul.f32 0.3275911, %v1794_v36  ;;  %v1805_v40 = vadd.f32 %v909_v1, %v860_v33  ;;  %v1039_v25 = vsub.f32 0.0, %v1794_v36  ;;  %v1091_v1 = vld [vmem:[%s1971_s10 + $0x80] sm:$0xff]  ;;  %s1374_s10 = smov [#allocation4]  }
 0x999   :  { %1149 = vmatpush.msra.mxu0 %v1091_v1  ;;  %s1178_s4 = sshll.u32 %s1374_s10, 4  ;;  %s1179_s4 = int_to_ptr.vmem [resolvable:$true] %s1178_s4 }
 0x99a   :  { %v1813_v43 = vadd.f32 1.0, %v935_v39  ;;  %v1816_v44 = vmul.f32 0.70710677, %v1805_v40  ;;  %v1043_v38 = vmul.f32 %v1039_v25, %v1794_v36  ;;  %1186 = dma.vmem_to_hbm [thread:$0]  %s1179_s4, 1024, %s1181_s0, [#allocation5], %s1375_s29, %s1375_s29, %s1376_s30  }
 0x99c   :  { %1297 = vrcp.f32 %v1813_v43  ;;  %v1826_v47 = vand.u32 2147483647, %v1816_v44  ;;  %v954_v3 = vand.u32 2147483648, %v1813_v43  ;;  %v952_v5 = vand.u32 2147483647, %v1813_v43 }
 0x99d   :  { %vm948_vm4 = vweird.f32 %v1813_v43  ;;  %v1047_v36 = vmul.f32 1.442695, %v1043_v38 }
 0x99e   :  { %v936_v50 = vmul.f32 0.3275911, %v1826_v47  ;;  %v955_v18 = vor.u32 1.1754944e-38, %v954_v3  ;;  %vm953_vm6 = vcmp.eq.f32.partialorder %v952_v5, 8.507059e+37  ;;  %v1040_v45 = vsub.f32 0.0, %v1826_v47 }
 0x9a0   :  { %v1841_v53 = vadd.f32 1.0, %v936_v50 }
 0x9a1   :  { %v889_v54 = vpop.f32.mrf.mxu1 }
 0x9a2   :  { %v1298_v55 = vpop.eup %1297  ;;  %v1849_v56 = vadd.f32 %v889_v54, %v859_v23  ;;  %1299 = vrcp.f32 %v1841_v53  ;;  %v969_v30 = vand.u32 2147483648, %v1841_v53  ;;  %v967_v34 = vand.u32 2147483647, %v1841_v53 }
 0x9a3   :  { %v944_v57 = vmul.f32 %v1298_v55, %v1813_v43  ;;  %vm949_vm3 = vweird.f32 %v1298_v55  ;;  %vm963_vm8 = vweird.f32 %v1841_v53  ;;  %v1044_v54 = vmul.f32 %v1040_v45, %v1826_v47 }
 0x9a4   :  { %v1860_v62 = vmul.f32 0.70710677, %v1849_v56  ;;  %vm950_vm5 = vmor %vm948_vm4, %vm949_vm3  ;;  %v970_v43 = vor.u32 1.1754944e-38, %v969_v30  ;;  %vm968_vm10 = vcmp.eq.f32.partialorder %v967_v34, 8.507059e+37  ;;  %v1373_v30 = vmov -1.0  }
 0x9a5   :  { %v945_v61 = vsub.f32 1.0, %v944_v57  ;;  %v1049_v3 = vmul.f32 1.442695, %v1044_v54  ;;  %v927_v32 = vsel %vm923_vm12, 1.0, %v1373_v30 }
 0x9a6   :  { %v1871_v8 = vand.u32 2147483647, %v1860_v62 }
 0x9a7   :  { %v946_v4 = vmul.f32 %v1298_v55, %v945_v61  ;;  %v912_v9 = vpop.f32.mrf.mxu2 }
 0x9a8   :  { %v1881_v12 = vadd.f32 %v912_v9, %v860_v33  ;;  %v1300_v13 = vpop.eup %1299  ;;  %v937_v15 = vmul.f32 0.3275911, %v1871_v8  ;;  %v1041_v47 = vsub.f32 0.0, %v1871_v8 }
 0x9a9   :  { %v947_v14 = vadd.f32 %v1298_v55, %v946_v4  ;;  %v959_v19 = vmul.f32 %v1300_v13, %v1841_v53  ;;  %vm964_vm7 = vweird.f32 %v1300_v13 }
 0x9aa   :  { %v1894_v20 = vmul.f32 0.70710677, %v1881_v12  ;;  %v941_v22 = vadd.f32 1.0, %v937_v15  ;;  %vm965_vm9 = vmor %vm963_vm8, %vm964_vm7  ;;  %v1045_v1 = vmul.f32 %v1041_v47, %v1871_v8 }
 0x9ab   :  { %v951_v21 = vsel %vm950_vm5, %v1298_v55, %v947_v14  ;;  %v960_v58 = vsub.f32 1.0, %v959_v19  ;;  %vm924_vm5 = vcmp.ge.f32.partialorder %v1816_v44, 0.0 }
 0x9ac   :  { %v1899_v23 = vsel %vm953_vm6, %v955_v18, %v951_v21  ;;  %v1903_v26 = vand.u32 2147483647, %v1894_v20  ;;  %1301 = vrcp.f32 %v941_v22  ;;  %v982_v57 = vand.u32 2147483647, %v941_v22 }
 0x9ad   :  { %v1003_v28 = vmul.f32 1.0614054, %v1899_v23  ;;  %v961_v33 = vmul.f32 %v1300_v13, %v960_v58  ;;  %v984_v59 = vand.u32 2147483648, %v941_v22  ;;  %vm978_vm13 = vweird.f32 %v941_v22 }
 0x9ae   :  { %v938_v35 = vmul.f32 0.3275911, %v1903_v26  ;;  %vm983_vm15 = vcmp.eq.f32.partialorder %v982_v57, 8.507059e+37  ;;  %vm925_vm6 = vcmp.ge.f32.partialorder %v1860_v62, 0.0  ;;  %vm926_vm7 = vcmp.ge.f32.partialorder %v1894_v20, 0.0 }
 0x9af   :  { %v1007_v37 = vadd.f32 -1.4531521, %v1003_v28  ;;  %v962_v39 = vadd.f32 %v1300_v13, %v961_v33 }
 0x9b0   :  { %v1917_v41 = vadd.f32 1.0, %v938_v35 }
 0x9b1   :  { %v1011_v42 = vmul.f32 %v1007_v37, %v1899_v23  ;;  %v966_v46 = vsel %vm965_vm9, %v1300_v13, %v962_v39  ;;  %v985_v13 = vor.u32 1.1754944e-38, %v984_v59  ;;  %v1042_v39 = vsub.f32 0.0, %v1903_v26 }
 0x9b2   :  { %1303 = vrcp.f32 %v1917_v41  ;;  %v1302_v48 = vpop.eup %1301  ;;  %v971_v50 = vsel %vm968_vm10, %v970_v43, %v966_v46  ;;  %v997_v16 = vand.u32 2147483647, %v1917_v41  ;;  %v999_v17 = vand.u32 2147483648, %v1917_v41 }
 0x9b3   :  { %v1015_v49 = vadd.f32 1.4214138, %v1011_v42  ;;  %v1004_v51 = vmul.f32 1.0614054, %v971_v50  ;;  %v974_v52 = vmul.f32 %v1302_v48, %v941_v22  ;;  %1305 = vpow2.f32 %v1047_v36 }
 0x9b4   :  { %vm979_vm11 = vweird.f32 %v1302_v48  ;;  %1307 = vpow2.f32 %v1049_v3  ;;  %vm993_vm2 = vweird.f32 %v1917_v41  ;;  %vm998_vm4 = vcmp.eq.f32.partialorder %v997_v16, 8.507059e+37 }
 0x9b5   :  { %v1019_v53 = vmul.f32 %v1015_v49, %v1899_v23  ;;  %v1008_v6 = vadd.f32 -1.4531521, %v1004_v51  ;;  %v975_v7 = vsub.f32 1.0, %v974_v52  ;;  %vm980_vm14 = vmor %vm978_vm13, %vm979_vm11  ;;  %v915_v49 = vmul.f32 0.5, %v1775_v29 }
 0x9b6   :  { %v1051_v51 = vmul.f32 1.442695, %v1045_v1  ;;  %v928_v59 = vsel %vm924_vm5, 1.0, %v1373_v30 }
 0x9b7   :  { %v1023_v55 = vadd.f32 -0.28449672, %v1019_v53  ;;  %v1012_v61 = vmul.f32 %v1008_v6, %v971_v50  ;;  %v976_v63 = vmul.f32 %v1302_v48, %v975_v7  ;;  %v1046_v53 = vmul.f32 %v1042_v39, %v1903_v26 }
 0x9b8   :  { %v1304_v60 = vpop.eup %1303  ;;  %1309 = vpow2.f32 %v1051_v51 }
 0x9b9   :  { %v1027_v2 = vmul.f32 %v1023_v55, %v1899_v23  ;;  %v989_v4 = vmul.f32 %v1304_v60, %v1917_v41  ;;  %v1016_v5 = vadd.f32 1.4214138, %v1012_v61  ;;  %v977_v9 = vadd.f32 %v1302_v48, %v976_v63  ;;  %v1306_v31 = vpop.eup %1305 }
 0x9ba   :  { %vm994_vm1 = vweird.f32 %v1304_v60  ;;  %v1308_v0 = vpop.eup %1307  ;;  %v1053_v29 = vmul.f32 1.442695, %v1046_v53 }
 0x9bb   :  { %v1031_v11 = vadd.f32 0.2548296, %v1027_v2  ;;  %v990_v10 = vsub.f32 1.0, %v989_v4  ;;  %v1020_v14 = vmul.f32 %v1016_v5, %v971_v50  ;;  %v981_v15 = vsel %vm980_vm14, %v1302_v48, %v977_v9  ;;  %vm995_vm3 = vmor %vm993_vm2, %vm994_vm1 }
 0x9bc   :  { %v986_v19 = vsel %vm983_vm15, %v985_v13, %v981_v15  ;;  %v916_v2 = vmul.f32 0.5, %v1805_v40  ;;  %1311 = vpow2.f32 %v1053_v29 }
 0x9bd   :  { %v1035_v18 = vmul.f32 %v1031_v11, %v1899_v23  ;;  %v991_v21 = vmul.f32 %v1304_v60, %v990_v10  ;;  %v1024_v25 = vadd.f32 -0.28449672, %v1020_v14  ;;  %v1005_v58 = vmul.f32 1.0614054, %v986_v19 }
 0x9be   :  { %v1000_v23 = vor.u32 1.1754944e-38, %v999_v17  ;;  %v1310_v47 = vpop.eup %1309  ;;  %v929_v14 = vsel %vm925_vm6, 1.0, %v1373_v30 }
 0x9bf   :  { %v1055_v22 = vmul.f32 %v1306_v31, %v1035_v18  ;;  %v992_v28 = vadd.f32 %v1304_v60, %v991_v21  ;;  %v1028_v33 = vmul.f32 %v1024_v25, %v971_v50  ;;  %v1009_v34 = vadd.f32 -1.4531521, %v1005_v58 }
 0x9c0   :  { %v917_v18 = vmul.f32 0.5, %v1849_v56  ;;  %v930_v25 = vsel %vm926_vm7, 1.0, %v1373_v30  ;;  %v918_v58 = vmul.f32 0.5, %v1881_v12  ;;  %v1254_v56 = vld [vmem:[%s1972_s11] ss:$0 sm:$0xff] }
 0x9c1   :  { %v1059_v35 = vsub.f32 1.0, %v1055_v22  ;;  %v996_v37 = vsel %vm995_vm3, %v1304_v60, %v992_v28  ;;  %v1032_v38 = vadd.f32 0.2548296, %v1028_v33  ;;  %v1013_v42 = vmul.f32 %v1009_v34, %v986_v19 }
 0x9c2   :  { %v1001_v43 = vsel %vm998_vm4, %v1000_v23, %v996_v37  ;;  %v1312_v16 = vpop.eup %1311 }
 0x9c3   :  { %v1063_v41 = vmul.f32 %v1059_v35, %v927_v32  ;;  %v1006_v45 = vmul.f32 1.0614054, %v1001_v43  ;;  %v1036_v46 = vmul.f32 %v1032_v38, %v971_v50  ;;  %v1017_v48 = vadd.f32 1.4214138, %v1013_v42 }
 0x9c5   :  { %v1067_v36 = vadd.f32 1.0, %v1063_v41  ;;  %v1010_v52 = vadd.f32 -1.4531521, %v1006_v45  ;;  %v1056_v8 = vmul.f32 %v1308_v0, %v1036_v46  ;;  %v1021_v54 = vmul.f32 %v1017_v48, %v986_v19 }
 0x9c7   :  { %v1071_v6 = vmul.f32 %v1067_v36, %v915_v49  ;;  %v1014_v7 = vmul.f32 %v1010_v52, %v1001_v43  ;;  %v1060_v55 = vsub.f32 1.0, %v1056_v8  ;;  %v1025_v57 = vadd.f32 -0.28449672, %v1021_v54 }
 0x9c9   :  { %1127 = vmatmul.f32.vlgmr.msrb.gmra.mxu3 %v1071_v6  ;;  %v1018_v50 = vadd.f32 1.4214138, %v1014_v7  ;;  %v1064_v60 = vmul.f32 %v1060_v55, %v928_v59  ;;  %v1029_v61 = vmul.f32 %v1025_v57, %v986_v19 }
 0x9cb   :  { %v1022_v63 = vmul.f32 %v1018_v50, %v1001_v43  ;;  %v1068_v44 = vadd.f32 1.0, %v1064_v60  ;;  %v1033_v3 = vadd.f32 0.2548296, %v1029_v61 }
 0x9cd   :  { %v1026_v4 = vadd.f32 -0.28449672, %v1022_v63  ;;  %v1072_v26 = vmul.f32 %v1068_v44, %v916_v2  ;;  %v1037_v5 = vmul.f32 %v1033_v3, %v986_v19 }
 0x9cf   :  { %v1030_v9 = vmul.f32 %v1026_v4, %v1001_v43  ;;  %1150 = vmatmul.f32.vlgmr.msra.gmra.mxu0 %v1072_v26  ;;  %v1057_v11 = vmul.f32 %v1310_v47, %v1037_v5 }
 0x9d1   :  { %v1034_v10 = vadd.f32 0.2548296, %v1030_v9  ;;  %v1061_v13 = vsub.f32 1.0, %v1057_v11 }
 0x9d3   :  { %v1038_v15 = vmul.f32 %v1034_v10, %v1001_v43  ;;  %v1065_v17 = vmul.f32 %v1061_v13, %v929_v14 }
 0x9d5   :  { %v1058_v40 = vmul.f32 %v1312_v16, %v1038_v15  ;;  %v1069_v21 = vadd.f32 1.0, %v1065_v17 }
 0x9d7   :  { %v1062_v19 = vsub.f32 1.0, %v1058_v40  ;;  %v1073_v31 = vmul.f32 %v1069_v21, %v917_v18 }
 0x9d9   :  { %v1066_v62 = vmul.f32 %v1062_v19, %v930_v25  ;;  %1130 = vmatmul.f32.gmra.mxu3 %v1073_v31 }
 0x9db   :  { %v1070_v22 = vadd.f32 1.0, %v1066_v62 }
 0x9dd   :  { %v1074_v28 = vmul.f32 %v1070_v22, %v918_v58 }
 0x9df   :  { %1153 = vmatmul.f32.gmra.mxu0 %v1074_v28 }
 0xa4c   :  { %v1128_v20 = vpop.f32.mrf.mxu3  ;;  %v1151_v30 = vpop.f32.mrf.mxu0 }
 0xa4d   :  { %v1129_v12 = vadd.f32 %v1254_v56, %v1128_v20 }
 0xa4f   :  { %v1152_v32 = vadd.f32 %v1151_v30, %v1129_v12 }
 0xa51   :  { %v1157_v33 = vadd.f32 %v1152_v32, %v1674_v24 }
 0xa53   :  { %1159 = vst.msk [vmem:[#allocation2] sm:$0xff] %vm49_vm0, %v1157_v33 }
 0xa5c   :  { %v1131_v34 = vpop.f32.mrf.mxu3  ;;  %v1154_v35 = vpop.f32.mrf.mxu0 }
 0xa5d   :  { %v1132_v23 = vadd.f32 %v1254_v56, %v1131_v34 }
 0xa5f   :  { %v1155_v1 = vadd.f32 %v1154_v35, %v1132_v23 }
 0xa61   :  { %v1158_v37 = vadd.f32 %v1155_v1, %v1679_v27 }
 0xa63   :  { %1160 = vst.msk [vmem:[#allocation2 + $0x8] sm:$0xff] %vm49_vm0, %v1158_v37 }
 0xa64   :  { %1173 = dma.vmem_to_hbm [thread:$0]  %s1166_s16, 256, %s1168_s8, [#allocation3], %s1375_s29, %s1375_s29, %s1376_s30  }
 0xa65   :  { %1361 = dma.done.wait [#allocation3], 256  }
 0xa66   :  { %1362 = vsyncadd [#allocation3], 4294967040 }
 0xa67   :  { %1363 = dma.done.wait [#allocation5], 1024  }
 0xa68   :  { %1364 = vsyncadd [#allocation5], 4294966272 }
 0xa69   :  { %1195 = vsyncpa [#allocation3], 1 }
 0xa6a   :  { %1196 = vsyncpa [#allocation5], 1 }

</bundles_post_ra>
